<compile_context>
chip_gen: v7x
topology: tpu7x:2x2x1
jax: 0.10.0
libtpu: 0.0.40
codegen_flags: <defaults>
</compile_context>

<pallas_src>
import functools

import jax
import jax.numpy as jnp
import numpy as np
from jax.experimental import pallas as pl
from jax.experimental.pallas import tpu as pltpu


# ----------------------------- Pallas kernels ------------------------------

def _fused_conv_kernel(p_ref, w_ref, b_ref, o_ref, *, mode, slope, eps):
    """One M-tile of: out = epilogue(patches @ weights + bias).

    epilogue: mode == "leaky"    -> LeakyReLU(slope)
              mode == "bn_leaky" -> BatchNorm (batch stats) + LeakyReLU(slope).
                                    Requires the WHOLE [M, Cout] slab in this
                                    single block so the stats are exact.
              mode == "none"     -> identity
    MXU inputs are bf16; accumulation and the epilogue run in f32.
    """
    acc = jnp.dot(p_ref[...], w_ref[...], preferred_element_type=jnp.float32)
    acc = acc + b_ref[...]                       # bias folded into the epilogue
    if mode == "bn_leaky":
        mean = jnp.mean(acc, axis=0, keepdims=True)
        var = jnp.mean((acc - mean) ** 2, axis=0, keepdims=True)  # biased (train)
        acc = (acc - mean) * jax.lax.rsqrt(var + eps)
    if mode in ("leaky", "bn_leaky"):
        acc = jnp.where(acc >= 0.0, acc, slope * acc)
    o_ref[...] = acc.astype(o_ref.dtype)


def _final_conv_kernel(p_ref, w_ref, b_ref, o_ref):
    """Cout==1 conv head: VPU broadcast-mul + lane reduction (no MXU, no
    M padding).  p:[M,K] bf16, w:[1,K] bf16, b:[1,1] f32 -> o:[M,1] f32."""
    p = p_ref[...].astype(jnp.float32)
    w = w_ref[...].astype(jnp.float32)
    o_ref[...] = jnp.sum(p * w, axis=-1, keepdims=True) + b_ref[...]


# ------------------------------ layer wrapper -------------------------------

def _im2col(x_nhwc, KH, KW, stride, padding, Ho, Wo):
    """[N,H,W,Cin] -> [N*Ho*Wo, KH*KW*Cin] with k = (kh*KW + kw)*Cin + cin."""
    N, _, _, Cin = x_nhwc.shape
    x_pad = jnp.pad(x_nhwc, ((0, 0), (padding, padding), (padding, padding), (0, 0)))
    slabs = [x_pad[:, kh:kh + stride * Ho:stride, kw:kw + stride * Wo:stride, :]
             for kh in range(KH) for kw in range(KW)]
    return jnp.stack(slabs, axis=3).reshape(N * Ho * Wo, KH * KW * Cin)


def conv_block(x_nhwc, w, b, *, stride, padding, mode, out_dtype=jnp.bfloat16):
    """One fused Conv2d(+BN)(+LeakyReLU) layer as a single pallas_call.

    x_nhwc: [N,H,W,Cin];  w: [Cout,Cin,KH,KW] (PyTorch layout);  b: [Cout].
    """
    N, H, W, Cin = x_nhwc.shape
    Cout, _, KH, KW = w.shape
    Ho = (H + 2 * padding - KH) // stride + 1
    Wo = (W + 2 * padding - KW) // stride + 1
    M, K = N * Ho * Wo, KH * KW * Cin

    # im2col in bf16: halves the bytes of the dominant (KH*KW-inflated) stream.
    patches = _im2col(x_nhwc.astype(jnp.bfloat16), KH, KW, stride, padding, Ho, Wo)
    # weight matrix matching the (kh, kw, cin) patch ordering: [K, Cout]
    w_mat = jnp.transpose(w, (2, 3, 1, 0)).reshape(K, Cout).astype(jnp.bfloat16)
    b_row = b.reshape(1, Cout).astype(jnp.float32)

    if mode == "none" and Cout == 1:
        # Final 1-channel head: M == N tiny -> VPU reduce, f32 output, no padding.
        out = pl.pallas_call(
            _final_conv_kernel,
            out_shape=jax.ShapeDtypeStruct((M, 1), jnp.float32),
            grid=(1,),
            in_specs=[pl.BlockSpec((M, K), lambda i: (0, 0)),
                      pl.BlockSpec((1, K), lambda i: (0, 0)),
                      pl.BlockSpec((1, 1), lambda i: (0, 0))],
            out_specs=pl.BlockSpec((M, 1), lambda i: (0, 0)),
        )(patches, w_mat.reshape(1, K), b_row.reshape(1, 1))
        return out.reshape(N, Ho, Wo, 1)

    if mode == "bn_leaky":
        # BN batch stats need the whole [M, Cout] slab resident in one block.
        # TODO(synk): large N*Ho*Wo would need a cross-tile mean/var pass.
        tm = M
    else:
        # No cross-row coupling: expose >=2 'parallel' steps for v7x megacore
        # when the layer is large enough, otherwise one block.
        tm = 256 if (M > 256 and M % 256 == 0) else M
    grid_m = M // tm

    kernel = functools.partial(_fused_conv_kernel, mode=mode, slope=0.2, eps=1e-5)
    out = pl.pallas_call(
        kernel,
        out_shape=jax.ShapeDtypeStruct((M, Cout), out_dtype),
        grid=(grid_m,),
        in_specs=[pl.BlockSpec((tm, K), lambda i: (i, 0)),
                  pl.BlockSpec((K, Cout), lambda i: (0, 0)),
                  pl.BlockSpec((1, Cout), lambda i: (0, 0))],   # tiny bias DMA
        out_specs=pl.BlockSpec((tm, Cout), lambda i: (i, 0)),
        compiler_params=pltpu.CompilerParams(
            dimension_semantics=("parallel",)),
    )(patches, w_mat, b_row)
    return out.reshape(N, Ho, Wo, Cout)


# ------------------------------- Discriminator ------------------------------

def init_params(key, input_channels=3, ndf=8):
    """Deterministic synthetic weights with the module's shapes (f32)."""
    dims = [
        (input_channels, ndf),
        (ndf, ndf * 2),
        (ndf * 2, ndf * 4),
        (ndf * 4, ndf * 8),
        (ndf * 8, 1),
    ]
    params = []
    for cin, cout in dims:
        key, kw_, kb_ = jax.random.split(key, 3)
        w = jax.random.normal(kw_, (cout, cin, 4, 4), jnp.float32) * 0.05
        b = jax.random.normal(kb_, (cout,), jnp.float32) * 0.01
        params.append((w, b))
    return params


def discriminator_forward(x_nchw, params):
    x = jnp.transpose(x_nchw, (0, 2, 3, 1))               # NCHW -> NHWC
    # Conv -> LeakyReLU(0.2)
    x = conv_block(x, *params[0], stride=2, padding=1, mode="leaky")
    # 3 x (Conv -> BatchNorm -> LeakyReLU(0.2)), fused per layer
    for i in (1, 2, 3):
        x = conv_block(x, *params[i], stride=2, padding=1, mode="bn_leaky")
    # final Conv (stride 1, padding 1, Cout=1), no activation
    x = conv_block(x, *params[4], stride=1, padding=1, mode="none")
    return jnp.transpose(x, (0, 3, 1, 2))                 # NHWC -> NCHW


# --------------------------- pure-JAX reference -----------------------------

def reference_forward(x_nchw, params):
    def conv(x, w, b, stride, padding):
        out = jax.lax.conv_general_dilated(
            x, w, window_strides=(stride, stride),
            padding=((padding, padding), (padding, padding)),
            dimension_numbers=("NCHW", "OIHW", "NCHW"))
        return out + b[None, :, None, None]

    def leaky(x):
        return jnp.where(x >= 0, x, 0.2 * x)

    def bn(x, eps=1e-5):
        mean = jnp.mean(x, axis=(0, 2, 3), keepdims=True)
        var = jnp.mean((x - mean) ** 2, axis=(0, 2, 3), keepdims=True)
        return (x - mean) * jax.lax.rsqrt(var + eps)

    x = leaky(conv(x_nchw, *params[0], 2, 1))
    for i in (1, 2, 3):
        x = leaky(bn(conv(x, *params[i], 2, 1)))
    return conv(x, *params[4], 1, 1)


# ------------------------------------ main -----------------------------------

if __name__ == "__main__":
    key = jax.random.PRNGKey(0)
    kp, kx = jax.random.split(key)

    params = init_params(kp, input_channels=3, ndf=8)
    x = jax.random.normal(kx, (2, 3, 32, 32), jnp.float32)       # small NCHW input

    fwd = jax.jit(discriminator_forward)
    out = jax.block_until_ready(fwd(x, params))

    ref = reference_forward(x, params)
    assert out.shape == ref.shape == (2, 1, 1, 1), (out.shape, ref.shape)
    # bf16 MXU/patch inputs with f32 accumulation & f32 BN: ~1% expected
    # deviation from the all-f32 reference after 5 convs + 3 batch-norms.
    np.testing.assert_allclose(np.asarray(out), np.asarray(ref),
                               rtol=3e-2, atol=3e-2)

    print("KERNEL_OK")
</pallas_src>

<mosaic_0001>
module attributes {stable_mosaic.version = 11 : i64} {
  func.func @_fused_conv_kernel(%arg0: i32, %arg1: memref<256x48xbf16, #tpu.memory_space<vmem>>, %arg2: memref<48x8xbf16, #tpu.memory_space<vmem>>, %arg3: memref<1x8xf32, #tpu.memory_space<vmem>>, %arg4: memref<256x8xbf16, #tpu.memory_space<vmem>>) attributes {dimension_semantics = [#tpu.dimension_semantics<parallel>], iteration_bounds = array<i64: 2>, scalar_prefetch = 0 : i64, scratch_operands = 0 : i64, tpu.core_type = #tpu.core_type<tc>, window_params = [{transform_indices = @transform_0, window_bounds = array<i64: 256, 48>}, {pipeline_mode = #tpu.pipeline_mode<synchronous>, transform_indices = @transform_1, window_bounds = array<i64: 48, 8>}, {pipeline_mode = #tpu.pipeline_mode<synchronous>, transform_indices = @transform_2, window_bounds = array<i64: 1, 8>}, {transform_indices = @transform_3, window_bounds = array<i64: 256, 8>}]} {
    %c0 = arith.constant 0 : index
    %c0_0 = arith.constant 0 : index
    %0 = vector.load %arg1[%c0, %c0_0] : memref<256x48xbf16, #tpu.memory_space<vmem>>, vector<256x48xbf16>
    %c0_1 = arith.constant 0 : index
    %c0_2 = arith.constant 0 : index
    %1 = vector.load %arg2[%c0_1, %c0_2] : memref<48x8xbf16, #tpu.memory_space<vmem>>, vector<48x8xbf16>
    %cst = arith.constant dense<0.000000e+00> : vector<256x8xf32>
    %2 = tpu.matmul %0, %1, %cst {dimension_numbers = #tpu.dot_dimension_numbers<[1], [0], [0], [1], [0, 0, 1, 1], [], []>} : vector<256x48xbf16>, vector<48x8xbf16>, vector<256x8xf32> -> vector<256x8xf32>
    %c0_3 = arith.constant 0 : index
    %c0_4 = arith.constant 0 : index
    %3 = vector.load %arg3[%c0_3, %c0_4] : memref<1x8xf32, #tpu.memory_space<vmem>>, vector<1x8xf32>
    %4 = vector.broadcast %3 : vector<1x8xf32> to vector<256x8xf32>
    %5 = arith.addf %2, %4 : vector<256x8xf32>
    %cst_5 = arith.constant 0.000000e+00 : f32
    %6 = vector.broadcast %cst_5 : f32 to vector<256x8xf32>
    %7 = arith.cmpf oge, %5, %6 : vector<256x8xf32>
    %cst_6 = arith.constant 2.000000e-01 : f32
    %8 = vector.broadcast %cst_6 : f32 to vector<256x8xf32>
    %9 = arith.mulf %8, %5 : vector<256x8xf32>
    %10 = arith.select %7, %5, %9 : vector<256x8xi1>, vector<256x8xf32>
    %11 = arith.truncf %10 : vector<256x8xf32> to vector<256x8xbf16>
    %c0_7 = arith.constant 0 : index
    %c0_8 = arith.constant 0 : index
    %12 = vector.load %arg4[%c0_7, %c0_8] : memref<256x8xbf16, #tpu.memory_space<vmem>>, vector<256x8xbf16>
    tpu.vector_store %arg4[%c0_7, %c0_8], %11 {strides = array<i32>} : memref<256x8xbf16, #tpu.memory_space<vmem>>, vector<256x8xbf16>,
    return
  }
  func.func @transform_0(%arg0: i32) -> (i32, i32) {
    %c0_i32 = arith.constant 0 : i32
    %c0_i32_0 = arith.constant 0 : i32
    return %arg0, %c0_i32 : i32, i32
  }
  func.func @transform_1(%arg0: i32) -> (i32, i32) {
    %c0_i32 = arith.constant 0 : i32
    %c0_i32_0 = arith.constant 0 : i32
    %c0_i32_1 = arith.constant 0 : i32
    return %c0_i32, %c0_i32_0 : i32, i32
  }
  func.func @transform_2(%arg0: i32) -> (i32, i32) {
    %c0_i32 = arith.constant 0 : i32
    %c0_i32_0 = arith.constant 0 : i32
    %c0_i32_1 = arith.constant 0 : i32
    return %c0_i32, %c0_i32_0 : i32, i32
  }
  func.func @transform_3(%arg0: i32) -> (i32, i32) {
    %c0_i32 = arith.constant 0 : i32
    %c0_i32_0 = arith.constant 0 : i32
    return %arg0, %c0_i32 : i32, i32
  }
}

module attributes {stable_mosaic.version = 11 : i64} {
  func.func @_fused_conv_kernel(%arg0: i32, %arg1: memref<128x128xbf16, #tpu.memory_space<vmem>>, %arg2: memref<128x16xbf16, #tpu.memory_space<vmem>>, %arg3: memref<1x16xf32, #tpu.memory_space<vmem>>, %arg4: memref<128x16xbf16, #tpu.memory_space<vmem>>) attributes {dimension_semantics = [#tpu.dimension_semantics<parallel>], iteration_bounds = array<i64: 1>, scalar_prefetch = 0 : i64, scratch_operands = 0 : i64, tpu.core_type = #tpu.core_type<tc>, window_params = [{transform_indices = @transform_0, window_bounds = array<i64: 128, 128>}, {pipeline_mode = #tpu.pipeline_mode<synchronous>, transform_indices = @transform_1, window_bounds = array<i64: 128, 16>}, {pipeline_mode = #tpu.pipeline_mode<synchronous>, transform_indices = @transform_2, window_bounds = array<i64: 1, 16>}, {transform_indices = @transform_3, window_bounds = array<i64: 128, 16>}]} {
    %c0 = arith.constant 0 : index
    %c0_0 = arith.constant 0 : index
    %0 = vector.load %arg1[%c0, %c0_0] : memref<128x128xbf16, #tpu.memory_space<vmem>>, vector<128x128xbf16>
    %c0_1 = arith.constant 0 : index
    %c0_2 = arith.constant 0 : index
    %1 = vector.load %arg2[%c0_1, %c0_2] : memref<128x16xbf16, #tpu.memory_space<vmem>>, vector<128x16xbf16>
    %cst = arith.constant dense<0.000000e+00> : vector<128x16xf32>
    %2 = tpu.matmul %0, %1, %cst {dimension_numbers = #tpu.dot_dimension_numbers<[1], [0], [0], [1], [0, 0, 1, 1], [], []>} : vector<128x128xbf16>, vector<128x16xbf16>, vector<128x16xf32> -> vector<128x16xf32>
    %c0_3 = arith.constant 0 : index
    %c0_4 = arith.constant 0 : index
    %3 = vector.load %arg3[%c0_3, %c0_4] : memref<1x16xf32, #tpu.memory_space<vmem>>, vector<1x16xf32>
    %4 = vector.broadcast %3 : vector<1x16xf32> to vector<128x16xf32>
    %5 = arith.addf %2, %4 : vector<128x16xf32>
    %cst_5 = arith.constant dense<0.000000e+00> : vector<16xf32>
    %6 = vector.multi_reduction <add>, %5, %cst_5 [0] : vector<128x16xf32> to vector<16xf32>
    %7 = vector.shape_cast %6 : vector<16xf32> to vector<1x16xf32>
    %cst_6 = arith.constant 1.280000e+02 : f32
    %8 = vector.broadcast %cst_6 : f32 to vector<1x16xf32>
    %9 = arith.divf %7, %8 : vector<1x16xf32>
    %10 = vector.broadcast %9 : vector<1x16xf32> to vector<128x16xf32>
    %11 = arith.subf %5, %10 : vector<128x16xf32>
    %12 = arith.mulf %11, %11 : vector<128x16xf32>
    %cst_7 = arith.constant dense<0.000000e+00> : vector<16xf32>
    %13 = vector.multi_reduction <add>, %12, %cst_7 [0] : vector<128x16xf32> to vector<16xf32>
    %14 = vector.shape_cast %13 : vector<16xf32> to vector<1x16xf32>
    %cst_8 = arith.constant 1.280000e+02 : f32
    %15 = vector.broadcast %cst_8 : f32 to vector<1x16xf32>
    %16 = arith.divf %14, %15 : vector<1x16xf32>
    %17 = vector.broadcast %9 : vector<1x16xf32> to vector<128x16xf32>
    %18 = arith.subf %5, %17 : vector<128x16xf32>
    %cst_9 = arith.constant 9.99999974E-6 : f32
    %19 = vector.broadcast %cst_9 : f32 to vector<1x16xf32>
    %20 = arith.addf %16, %19 : vector<1x16xf32>
    %21 = math.rsqrt %20 : vector<1x16xf32>
    %22 = vector.broadcast %21 : vector<1x16xf32> to vector<128x16xf32>
    %23 = arith.mulf %18, %22 : vector<128x16xf32>
    %cst_10 = arith.constant 0.000000e+00 : f32
    %24 = vector.broadcast %cst_10 : f32 to vector<128x16xf32>
    %25 = arith.cmpf oge, %23, %24 : vector<128x16xf32>
    %cst_11 = arith.constant 2.000000e-01 : f32
    %26 = vector.broadcast %cst_11 : f32 to vector<128x16xf32>
    %27 = arith.mulf %26, %23 : vector<128x16xf32>
    %28 = arith.select %25, %23, %27 : vector<128x16xi1>, vector<128x16xf32>
    %29 = arith.truncf %28 : vector<128x16xf32> to vector<128x16xbf16>
    %c0_12 = arith.constant 0 : index
    %c0_13 = arith.constant 0 : index
    %30 = vector.load %arg4[%c0_12, %c0_13] : memref<128x16xbf16, #tpu.memory_space<vmem>>, vector<128x16xbf16>
    tpu.vector_store %arg4[%c0_12, %c0_13], %29 {strides = array<i32>} : memref<128x16xbf16, #tpu.memory_space<vmem>>, vector<128x16xbf16>,
    return
  }
  func.func @transform_0(%arg0: i32) -> (i32, i32) {
    %c0_i32 = arith.constant 0 : i32
    %c0_i32_0 = arith.constant 0 : i32
    return %arg0, %c0_i32 : i32, i32
  }
  func.func @transform_1(%arg0: i32) -> (i32, i32) {
    %c0_i32 = arith.constant 0 : i32
    %c0_i32_0 = arith.constant 0 : i32
    %c0_i32_1 = arith.constant 0 : i32
    return %c0_i32, %c0_i32_0 : i32, i32
  }
  func.func @transform_2(%arg0: i32) -> (i32, i32) {
    %c0_i32 = arith.constant 0 : i32
    %c0_i32_0 = arith.constant 0 : i32
    %c0_i32_1 = arith.constant 0 : i32
    return %c0_i32, %c0_i32_0 : i32, i32
  }
  func.func @transform_3(%arg0: i32) -> (i32, i32) {
    %c0_i32 = arith.constant 0 : i32
    %c0_i32_0 = arith.constant 0 : i32
    return %arg0, %c0_i32 : i32, i32
  }
}

module attributes {stable_mosaic.version = 11 : i64} {
  func.func @_fused_conv_kernel(%arg0: i32, %arg1: memref<32x256xbf16, #tpu.memory_space<vmem>>, %arg2: memref<256x32xbf16, #tpu.memory_space<vmem>>, %arg3: memref<1x32xf32, #tpu.memory_space<vmem>>, %arg4: memref<32x32xbf16, #tpu.memory_space<vmem>>) attributes {dimension_semantics = [#tpu.dimension_semantics<parallel>], iteration_bounds = array<i64: 1>, scalar_prefetch = 0 : i64, scratch_operands = 0 : i64, tpu.core_type = #tpu.core_type<tc>, window_params = [{transform_indices = @transform_0, window_bounds = array<i64: 32, 256>}, {pipeline_mode = #tpu.pipeline_mode<synchronous>, transform_indices = @transform_1, window_bounds = array<i64: 256, 32>}, {pipeline_mode = #tpu.pipeline_mode<synchronous>, transform_indices = @transform_2, window_bounds = array<i64: 1, 32>}, {transform_indices = @transform_3, window_bounds = array<i64: 32, 32>}]} {
    %c0 = arith.constant 0 : index
    %c0_0 = arith.constant 0 : index
    %0 = vector.load %arg1[%c0, %c0_0] : memref<32x256xbf16, #tpu.memory_space<vmem>>, vector<32x256xbf16>
    %c0_1 = arith.constant 0 : index
    %c0_2 = arith.constant 0 : index
    %1 = vector.load %arg2[%c0_1, %c0_2] : memref<256x32xbf16, #tpu.memory_space<vmem>>, vector<256x32xbf16>
    %cst = arith.constant dense<0.000000e+00> : vector<32x32xf32>
    %2 = tpu.matmul %0, %1, %cst {dimension_numbers = #tpu.dot_dimension_numbers<[1], [0], [0], [1], [0, 0, 1, 1], [], []>} : vector<32x256xbf16>, vector<256x32xbf16>, vector<32x32xf32> -> vector<32x32xf32>
    %c0_3 = arith.constant 0 : index
    %c0_4 = arith.constant 0 : index
    %3 = vector.load %arg3[%c0_3, %c0_4] : memref<1x32xf32, #tpu.memory_space<vmem>>, vector<1x32xf32>
    %4 = vector.broadcast %3 : vector<1x32xf32> to vector<32x32xf32>
    %5 = arith.addf %2, %4 : vector<32x32xf32>
    %cst_5 = arith.constant dense<0.000000e+00> : vector<32xf32>
    %6 = vector.multi_reduction <add>, %5, %cst_5 [0] : vector<32x32xf32> to vector<32xf32>
    %7 = vector.shape_cast %6 : vector<32xf32> to vector<1x32xf32>
    %cst_6 = arith.constant 3.200000e+01 : f32
    %8 = vector.broadcast %cst_6 : f32 to vector<1x32xf32>
    %9 = arith.divf %7, %8 : vector<1x32xf32>
    %10 = vector.broadcast %9 : vector<1x32xf32> to vector<32x32xf32>
    %11 = arith.subf %5, %10 : vector<32x32xf32>
    %12 = arith.mulf %11, %11 : vector<32x32xf32>
    %cst_7 = arith.constant dense<0.000000e+00> : vector<32xf32>
    %13 = vector.multi_reduction <add>, %12, %cst_7 [0] : vector<32x32xf32> to vector<32xf32>
    %14 = vector.shape_cast %13 : vector<32xf32> to vector<1x32xf32>
    %cst_8 = arith.constant 3.200000e+01 : f32
    %15 = vector.broadcast %cst_8 : f32 to vector<1x32xf32>
    %16 = arith.divf %14, %15 : vector<1x32xf32>
    %17 = vector.broadcast %9 : vector<1x32xf32> to vector<32x32xf32>
    %18 = arith.subf %5, %17 : vector<32x32xf32>
    %cst_9 = arith.constant 9.99999974E-6 : f32
    %19 = vector.broadcast %cst_9 : f32 to vector<1x32xf32>
    %20 = arith.addf %16, %19 : vector<1x32xf32>
    %21 = math.rsqrt %20 : vector<1x32xf32>
    %22 = vector.broadcast %21 : vector<1x32xf32> to vector<32x32xf32>
    %23 = arith.mulf %18, %22 : vector<32x32xf32>
    %cst_10 = arith.constant 0.000000e+00 : f32
    %24 = vector.broadcast %cst_10 : f32 to vector<32x32xf32>
    %25 = arith.cmpf oge, %23, %24 : vector<32x32xf32>
    %cst_11 = arith.constant 2.000000e-01 : f32
    %26 = vector.broadcast %cst_11 : f32 to vector<32x32xf32>
    %27 = arith.mulf %26, %23 : vector<32x32xf32>
    %28 = arith.select %25, %23, %27 : vector<32x32xi1>, vector<32x32xf32>
    %29 = arith.truncf %28 : vector<32x32xf32> to vector<32x32xbf16>
    %c0_12 = arith.constant 0 : index
    %c0_13 = arith.constant 0 : index
    %30 = vector.load %arg4[%c0_12, %c0_13] : memref<32x32xbf16, #tpu.memory_space<vmem>>, vector<32x32xbf16>
    tpu.vector_store %arg4[%c0_12, %c0_13], %29 {strides = array<i32>} : memref<32x32xbf16, #tpu.memory_space<vmem>>, vector<32x32xbf16>,
    return
  }
  func.func @transform_0(%arg0: i32) -> (i32, i32) {
    %c0_i32 = arith.constant 0 : i32
    %c0_i32_0 = arith.constant 0 : i32
    return %arg0, %c0_i32 : i32, i32
  }
  func.func @transform_1(%arg0: i32) -> (i32, i32) {
    %c0_i32 = arith.constant 0 : i32
    %c0_i32_0 = arith.constant 0 : i32
    %c0_i32_1 = arith.constant 0 : i32
    return %c0_i32, %c0_i32_0 : i32, i32
  }
  func.func @transform_2(%arg0: i32) -> (i32, i32) {
    %c0_i32 = arith.constant 0 : i32
    %c0_i32_0 = arith.constant 0 : i32
    %c0_i32_1 = arith.constant 0 : i32
    return %c0_i32, %c0_i32_0 : i32, i32
  }
  func.func @transform_3(%arg0: i32) -> (i32, i32) {
    %c0_i32 = arith.constant 0 : i32
    %c0_i32_0 = arith.constant 0 : i32
    return %arg0, %c0_i32 : i32, i32
  }
}

module attributes {stable_mosaic.version = 11 : i64} {
  func.func @_fused_conv_kernel(%arg0: i32, %arg1: memref<8x512xbf16, #tpu.memory_space<vmem>>, %arg2: memref<512x64xbf16, #tpu.memory_space<vmem>>, %arg3: memref<1x64xf32, #tpu.memory_space<vmem>>, %arg4: memref<8x64xbf16, #tpu.memory_space<vmem>>) attributes {dimension_semantics = [#tpu.dimension_semantics<parallel>], iteration_bounds = array<i64: 1>, scalar_prefetch = 0 : i64, scratch_operands = 0 : i64, tpu.core_type = #tpu.core_type<tc>, window_params = [{transform_indices = @transform_0, window_bounds = array<i64: 8, 512>}, {pipeline_mode = #tpu.pipeline_mode<synchronous>, transform_indices = @transform_1, window_bounds = array<i64: 512, 64>}, {pipeline_mode = #tpu.pipeline_mode<synchronous>, transform_indices = @transform_2, window_bounds = array<i64: 1, 64>}, {transform_indices = @transform_3, window_bounds = array<i64: 8, 64>}]} {
    %c0 = arith.constant 0 : index
    %c0_0 = arith.constant 0 : index
    %0 = vector.load %arg1[%c0, %c0_0] : memref<8x512xbf16, #tpu.memory_space<vmem>>, vector<8x512xbf16>
    %c0_1 = arith.constant 0 : index
    %c0_2 = arith.constant 0 : index
    %1 = vector.load %arg2[%c0_1, %c0_2] : memref<512x64xbf16, #tpu.memory_space<vmem>>, vector<512x64xbf16>
    %cst = arith.constant dense<0.000000e+00> : vector<8x64xf32>
    %2 = tpu.matmul %0, %1, %cst {dimension_numbers = #tpu.dot_dimension_numbers<[1], [0], [0], [1], [0, 0, 1, 1], [], []>} : vector<8x512xbf16>, vector<512x64xbf16>, vector<8x64xf32> -> vector<8x64xf32>
    %c0_3 = arith.constant 0 : index
    %c0_4 = arith.constant 0 : index
    %3 = vector.load %arg3[%c0_3, %c0_4] : memref<1x64xf32, #tpu.memory_space<vmem>>, vector<1x64xf32>
    %4 = vector.broadcast %3 : vector<1x64xf32> to vector<8x64xf32>
    %5 = arith.addf %2, %4 : vector<8x64xf32>
    %cst_5 = arith.constant dense<0.000000e+00> : vector<64xf32>
    %6 = vector.multi_reduction <add>, %5, %cst_5 [0] : vector<8x64xf32> to vector<64xf32>
    %7 = vector.shape_cast %6 : vector<64xf32> to vector<1x64xf32>
    %cst_6 = arith.constant 8.000000e+00 : f32
    %8 = vector.broadcast %cst_6 : f32 to vector<1x64xf32>
    %9 = arith.divf %7, %8 : vector<1x64xf32>
    %10 = vector.broadcast %9 : vector<1x64xf32> to vector<8x64xf32>
    %11 = arith.subf %5, %10 : vector<8x64xf32>
    %12 = arith.mulf %11, %11 : vector<8x64xf32>
    %cst_7 = arith.constant dense<0.000000e+00> : vector<64xf32>
    %13 = vector.multi_reduction <add>, %12, %cst_7 [0] : vector<8x64xf32> to vector<64xf32>
    %14 = vector.shape_cast %13 : vector<64xf32> to vector<1x64xf32>
    %cst_8 = arith.constant 8.000000e+00 : f32
    %15 = vector.broadcast %cst_8 : f32 to vector<1x64xf32>
    %16 = arith.divf %14, %15 : vector<1x64xf32>
    %17 = vector.broadcast %9 : vector<1x64xf32> to vector<8x64xf32>
    %18 = arith.subf %5, %17 : vector<8x64xf32>
    %cst_9 = arith.constant 9.99999974E-6 : f32
    %19 = vector.broadcast %cst_9 : f32 to vector<1x64xf32>
    %20 = arith.addf %16, %19 : vector<1x64xf32>
    %21 = math.rsqrt %20 : vector<1x64xf32>
    %22 = vector.broadcast %21 : vector<1x64xf32> to vector<8x64xf32>
    %23 = arith.mulf %18, %22 : vector<8x64xf32>
    %cst_10 = arith.constant 0.000000e+00 : f32
    %24 = vector.broadcast %cst_10 : f32 to vector<8x64xf32>
    %25 = arith.cmpf oge, %23, %24 : vector<8x64xf32>
    %cst_11 = arith.constant 2.000000e-01 : f32
    %26 = vector.broadcast %cst_11 : f32 to vector<8x64xf32>
    %27 = arith.mulf %26, %23 : vector<8x64xf32>
    %28 = arith.select %25, %23, %27 : vector<8x64xi1>, vector<8x64xf32>
    %29 = arith.truncf %28 : vector<8x64xf32> to vector<8x64xbf16>
    %c0_12 = arith.constant 0 : index
    %c0_13 = arith.constant 0 : index
    %30 = vector.load %arg4[%c0_12, %c0_13] : memref<8x64xbf16, #tpu.memory_space<vmem>>, vector<8x64xbf16>
    tpu.vector_store %arg4[%c0_12, %c0_13], %29 {strides = array<i32>} : memref<8x64xbf16, #tpu.memory_space<vmem>>, vector<8x64xbf16>,
    return
  }
  func.func @transform_0(%arg0: i32) -> (i32, i32) {
    %c0_i32 = arith.constant 0 : i32
    %c0_i32_0 = arith.constant 0 : i32
    return %arg0, %c0_i32 : i32, i32
  }
  func.func @transform_1(%arg0: i32) -> (i32, i32) {
    %c0_i32 = arith.constant 0 : i32
    %c0_i32_0 = arith.constant 0 : i32
    %c0_i32_1 = arith.constant 0 : i32
    return %c0_i32, %c0_i32_0 : i32, i32
  }
  func.func @transform_2(%arg0: i32) -> (i32, i32) {
    %c0_i32 = arith.constant 0 : i32
    %c0_i32_0 = arith.constant 0 : i32
    %c0_i32_1 = arith.constant 0 : i32
    return %c0_i32, %c0_i32_0 : i32, i32
  }
  func.func @transform_3(%arg0: i32) -> (i32, i32) {
    %c0_i32 = arith.constant 0 : i32
    %c0_i32_0 = arith.constant 0 : i32
    return %arg0, %c0_i32 : i32, i32
  }
}

module attributes {stable_mosaic.version = 11 : i64} {
  func.func @_final_conv_kernel(%arg0: i32, %arg1: memref<2x1024xbf16, #tpu.memory_space<vmem>>, %arg2: memref<1x1024xbf16, #tpu.memory_space<vmem>>, %arg3: memref<1x1xf32, #tpu.memory_space<vmem>>, %arg4: memref<2x1xf32, #tpu.memory_space<vmem>>) attributes {dimension_semantics = [#tpu.dimension_semantics<arbitrary>], iteration_bounds = array<i64: 1>, scalar_prefetch = 0 : i64, scratch_operands = 0 : i64, tpu.core_type = #tpu.core_type<tc>, window_params = [{pipeline_mode = #tpu.pipeline_mode<synchronous>, transform_indices = @transform_0, window_bounds = array<i64: 2, 1024>}, {pipeline_mode = #tpu.pipeline_mode<synchronous>, transform_indices = @transform_1, window_bounds = array<i64: 1, 1024>}, {pipeline_mode = #tpu.pipeline_mode<synchronous>, transform_indices = @transform_2, window_bounds = array<i64: 1, 1>}, {pipeline_mode = #tpu.pipeline_mode<synchronous>, transform_indices = @transform_3, window_bounds = array<i64: 2, 1>}]} {
    %c0 = arith.constant 0 : index
    %c0_0 = arith.constant 0 : index
    %0 = vector.load %arg1[%c0, %c0_0] : memref<2x1024xbf16, #tpu.memory_space<vmem>>, vector<2x1024xbf16>
    %1 = arith.extf %0 : vector<2x1024xbf16> to vector<2x1024xf32>
    %c0_1 = arith.constant 0 : index
    %c0_2 = arith.constant 0 : index
    %2 = vector.load %arg2[%c0_1, %c0_2] : memref<1x1024xbf16, #tpu.memory_space<vmem>>, vector<1x1024xbf16>
    %3 = arith.extf %2 : vector<1x1024xbf16> to vector<1x1024xf32>
    %4 = vector.broadcast %3 : vector<1x1024xf32> to vector<2x1024xf32>
    %5 = arith.mulf %1, %4 : vector<2x1024xf32>
    %cst = arith.constant dense<0.000000e+00> : vector<2xf32>
    %6 = vector.multi_reduction <add>, %5, %cst [1] : vector<2x1024xf32> to vector<2xf32>
    %7 = vector.shape_cast %6 : vector<2xf32> to vector<2x1xf32>
    %c0_3 = arith.constant 0 : index
    %c0_4 = arith.constant 0 : index
    %8 = vector.load %arg3[%c0_3, %c0_4] : memref<1x1xf32, #tpu.memory_space<vmem>>, vector<1x1xf32>
    %9 = vector.broadcast %8 : vector<1x1xf32> to vector<2x1xf32>
    %10 = arith.addf %7, %9 : vector<2x1xf32>
    %c0_5 = arith.constant 0 : index
    %c0_6 = arith.constant 0 : index
    %11 = vector.load %arg4[%c0_5, %c0_6] : memref<2x1xf32, #tpu.memory_space<vmem>>, vector<2x1xf32>
    tpu.vector_store %arg4[%c0_5, %c0_6], %10 {strides = array<i32>} : memref<2x1xf32, #tpu.memory_space<vmem>>, vector<2x1xf32>,
    return
  }
  func.func @transform_0(%arg0: i32) -> (i32, i32) {
    %c0_i32 = arith.constant 0 : i32
    %c0_i32_0 = arith.constant 0 : i32
    %c0_i32_1 = arith.constant 0 : i32
    return %c0_i32, %c0_i32_0 : i32, i32
  }
  func.func @transform_1(%arg0: i32) -> (i32, i32) {
    %c0_i32 = arith.constant 0 : i32
    %c0_i32_0 = arith.constant 0 : i32
    %c0_i32_1 = arith.constant 0 : i32
    return %c0_i32, %c0_i32_0 : i32, i32
  }
  func.func @transform_2(%arg0: i32) -> (i32, i32) {
    %c0_i32 = arith.constant 0 : i32
    %c0_i32_0 = arith.constant 0 : i32
    %c0_i32_1 = arith.constant 0 : i32
    return %c0_i32, %c0_i32_0 : i32, i32
  }
  func.func @transform_3(%arg0: i32) -> (i32, i32) {
    %c0_i32 = arith.constant 0 : i32
    %c0_i32_0 = arith.constant 0 : i32
    %c0_i32_1 = arith.constant 0 : i32
    return %c0_i32, %c0_i32_0 : i32, i32
  }
}

</mosaic_0001>

<bundles_post_ra>
// kernel: discriminator_forward.5
= control target key start
LH: loop header
LB: loop body
LE: loop exit
PB: predicated region body
PF: predicated region fallthrough
CT: control target
= control target key end

     0   :  { %s1070_s12 = smov 0   ;;  %s1241_s0 = inlined_call_operand.vmem [shape: bf16[512,48], index: 0, kind: input, shape index: {}]   ;;  %s1242_s1 = inlined_call_operand.vmem [shape: bf16[48,8], index: 1, kind: input, shape index: {}]   ;;  %s1243_s2 = inlined_call_operand.vmem [shape: f32[1,8], index: 2, kind: input, shape index: {}]   ;;  %s1244_s3 = inlined_call_operand.vmem [shape: bf16[512,8], index: 3, kind: output, shape index: {}]  }
   0x1 LB: > { %s841_s13 = sadd.s32 4294967295, %s1048_s12   ;;  %p845_p0 = scmp.ge.s32.totalorder %s1048_s12, 1  ;;  %s1048_s12 = sphi %s1070_s12, %s13_s12  }
   0x2   : > { %p138_p1 = scmp.lt.s32.totalorder %s1048_s12, 3 }
   0x4   : > { %p139_p2 = pnand %p845_p0, %p138_p1 }
   0x5   : > { %v1023_v0 = vld [vmem:[%s1242_s1] sm:$0xff] (!%p139_p2)   ;;  %s846_s16 = sshll.u32 (!%p139_p2), %s841_s13, 5  ;;  %v1024_v1 = vld [vmem:[%s1242_s1 + $0x8] sm:$0xff] (!%p139_p2)   ;;  %v1025_v2 = vld [vmem:[%s1242_s1 + $0x10] sm:$0xff] (!%p139_p2)   ;;  %vm318_vm0 = vcmask (!%p139_p2), 392192   ;;  %vm752_vm1 = vcmask (!%p139_p2), 60416  }
   0x6   : > { %142 = sbr.rel (%p139_p2) target bundleno = 278 (0x116), region = 32  ;;  %p163_p3 = scmp.lt.s32.totalorder (!%p139_p2), %s846_s16, 63  ;;  %971 = vmatprep.subr.bf16.mxu0 (!%p139_p2), %v1023_v0  ;;  %1009 = vmatprep.subr.bf16.mxu1 (!%p139_p2), %v1023_v0  ;;  %v1132_v19 = vld [vmem:[%s1243_s2] ss:$0 sm:$0xff] (!%p139_p2) }
   0x7   : > { %972 = vmatpush3.bf16.msra.mxu0 (!%p139_p2), %v1023_v0  ;;  %1012 = vmatpush3.bf16.msra.mxu1 (!%p139_p2), %v1023_v0 }
   0x8   : > { %973 = vmatprep.subr.bf16.mxu0 (!%p139_p2), %v1024_v1  ;;  %1010 = vmatprep.subr.bf16.mxu1 (!%p139_p2), %v1024_v1 }
   0xb   : > { %974 = vmatpush3.bf16.msra.mxu0 (!%p139_p2), %v1024_v1  ;;  %1013 = vmatpush3.bf16.msra.mxu1 (!%p139_p2), %v1024_v1 }
   0xc   : > { %975 = vmatprep.subr.bf16.mxu0 (!%p139_p2), %v1025_v2  ;;  %1011 = vmatprep.subr.bf16.mxu1 (!%p139_p2), %v1025_v2 }
   0xd   : > { %s1246_s16 = smov (!%p163_p3, %s846_s16), 63 }
   0xe   : > { %s847_s21 = sshll.u32 %s1246_s16, 2 }
   0xf   : > { %s1095_s24 = scalar_lea.vmem %s1241_s0, %s847_s21  ;;  %976 = vmatpush3.bf16.msra.mxu0 %v1025_v2  ;;  %1014 = vmatpush3.bf16.msra.mxu1 %v1025_v2  ;;  %s1143_s29 = scalar_lea.vmem %s1244_s3, %s847_s21 }
  0x10   : > { %v1026_v3 = vld [vmem:[%s1095_s24] sm:$0xff]   ;;  %v1028_v5 = vld [vmem:[%s1095_s24 + $0x8] sm:$0xff]   ;;  %v1030_v7 = vld [vmem:[%s1095_s24 + $0x10] sm:$0xff]  }
  0x11   : > { %v1027_v4 = vld [vmem:[%s1095_s24 + $0x40] sm:$0xff]   ;;  %977 = vmatprep.mubr.msk.bf16.mxu0 %vm318_vm0, %v1026_v3  ;;  %v1029_v6 = vld [vmem:[%s1095_s24 + $0x48] sm:$0xff]   ;;  %v1031_v8 = vld [vmem:[%s1095_s24 + $0x50] sm:$0xff]  }
  0x12   : > { %993 = vmatprep.mubr.msk.bf16.mxu1 %vm318_vm0, %v1027_v4  ;;  %978 = vmatmul.mubr.msk.bf16.vlgmr.msra.gmra.mrb[0].mxu0 %vm318_vm0, %v1028_v5  ;;  %v1032_v9 = vld [vmem:[%s1095_s24 + $0x18] sm:$0xff]   ;;  %v1034_v11 = vld [vmem:[%s1095_s24 + $0x20] sm:$0xff]   ;;  %v1036_v13 = vld [vmem:[%s1095_s24 + $0x28] sm:$0xff]  }
  0x13   : > { %994 = vmatmul.mubr.msk.bf16.vlgmr.msra.gmra.mrb[0].mxu1 %vm318_vm0, %v1029_v6  ;;  %981 = vmatprep.mubr.msk.bf16.mxu0 %vm318_vm0, %v1030_v7  ;;  %v1033_v10 = vld [vmem:[%s1095_s24 + $0x58] sm:$0xff]   ;;  %v1035_v12 = vld [vmem:[%s1095_s24 + $0x60] sm:$0xff]   ;;  %v1037_v14 = vld [vmem:[%s1095_s24 + $0x68] sm:$0xff]  }
  0x14   : > { %997 = vmatprep.mubr.msk.bf16.mxu1 %vm318_vm0, %v1031_v8  ;;  %v1038_v15 = vld [vmem:[%s1095_s24 + $0x30] sm:$0xff]   ;;  %v1040_v17 = vld [vmem:[%s1095_s24 + $0x38] sm:$0xff]  }
  0x15   : > { %v1039_v16 = vld [vmem:[%s1095_s24 + $0x70] sm:$0xff]   ;;  %v1041_v18 = vld [vmem:[%s1095_s24 + $0x78] sm:$0xff]  }
  0x1a   : > { %982 = vmatmul.mubr.msk.bf16.gmra.mrb[4].mxu0 %vm318_vm0, %v1032_v9 }
  0x1b   : > { %998 = vmatmul.mubr.msk.bf16.gmra.mrb[4].mxu1 %vm318_vm0, %v1033_v10  ;;  %985 = vmatprep.mubr.msk.bf16.mxu0 %vm318_vm0, %v1034_v11 }
  0x1c   : > { %1001 = vmatprep.mubr.msk.bf16.mxu1 %vm318_vm0, %v1035_v12 }
  0x22   : > { %986 = vmatmul.mubr.msk.bf16.gmra.mrb[8].mxu0 %vm318_vm0, %v1036_v13 }
  0x23   : > { %1002 = vmatmul.mubr.msk.bf16.gmra.mrb[8].mxu1 %vm318_vm0, %v1037_v14  ;;  %989 = vmatprep.mubr.msk.bf16.mxu0 %vm318_vm0, %v1038_v15 }
  0x24   : > { %1005 = vmatprep.mubr.msk.bf16.mxu1 %vm318_vm0, %v1039_v16 }
  0x2a   : > { %990 = vmatmul.mubr.msk.bf16.gmra.mrb[12].mxu0 %vm318_vm0, %v1040_v17 }
  0x2b   : > { %1006 = vmatmul.mubr.msk.bf16.gmra.mrb[12].mxu1 %vm318_vm0, %v1041_v18 }
  0xe5   : > { %v979_v20 = vpop.f32.mrb[0].mxu0 }
  0xe6   : > { %v995_v21 = vpop.f32.mrb[0].mxu1  ;;  %v410_v22 = vadd.f32 %v979_v20, %v1132_v19  ;;  %v401_v24 = vpop.f32.mrb[1].mxu0 }
  0xe7   : > { %v474_v23 = vadd.f32 %v995_v21, %v1132_v19  ;;  %v465_v25 = vpop.f32.mrb[1].mxu1  ;;  %v402_v26 = vadd.f32 %v1132_v19, %v401_v24  ;;  %v980_v28 = vpop.f32.mrb[2].mxu0 }
  0xe8   : > { %v466_v27 = vadd.f32 %v1132_v19, %v465_v25  ;;  %v996_v29 = vpop.f32.mrb[2].mxu1  ;;  %vm530_vm2 = vcmp.ge.f32.partialorder %v410_v22, 0.0  ;;  %v562_v30 = vmul.f32 0.2, %v410_v22  ;;  %v413_v36 = vadd.f32 %v980_v28, %v1132_v19  ;;  %v404_v38 = vpop.f32.mrb[3].mxu0 }
  0xe9   : > { %vm546_vm3 = vcmp.ge.f32.partialorder %v474_v23, 0.0  ;;  %v578_v31 = vmul.f32 0.2, %v474_v23  ;;  %vm528_vm4 = vcmp.ge.f32.partialorder %v402_v26, 0.0  ;;  %v560_v32 = vmul.f32 0.2, %v402_v26 }
  0xea   : > { %vm544_vm5 = vcmp.ge.f32.partialorder %v466_v27, 0.0  ;;  %v576_v33 = vmul.f32 0.2, %v466_v27  ;;  %v594_v34 = vsel %vm530_vm2, %v410_v22, %v562_v30  ;;  %v477_v37 = vadd.f32 %v996_v29, %v1132_v19  ;;  %v468_v39 = vpop.f32.mrb[3].mxu1 }
  0xeb   : > { %v610_v35 = vsel %vm546_vm3, %v474_v23, %v578_v31  ;;  %v922_v40 = vpack.c.bf16 %v594_v34, %v594_v34  ;;  %v592_v42 = vsel %vm528_vm4, %v402_v26, %v560_v32  ;;  %vm531_vm6 = vcmp.ge.f32.partialorder %v413_v36, 0.0 }
  0xec   : > { %v938_v41 = vpack.c.bf16 %v610_v35, %v610_v35  ;;  %v608_v43 = vsel %vm544_vm5, %v466_v27, %v576_v33  ;;  %v920_v44 = vpack.c.bf16 %v592_v42, %v592_v42  ;;  %v563_v46 = vmul.f32 0.2, %v413_v36 }
  0xed   : > { %v936_v45 = vpack.c.bf16 %v608_v43, %v608_v43  ;;  %755 = vst.msk [vmem:[%s1143_s29 + $0x8] sm:$0xf] %vm752_vm1, %v922_v40  ;;  %vm547_vm7 = vcmp.ge.f32.partialorder %v477_v37, 0.0  ;;  %v579_v47 = vmul.f32 0.2, %v477_v37  ;;  %v405_v48 = vadd.f32 %v1132_v19, %v404_v38  ;;  %v983_v50 = vpop.f32.mrb[4].mxu0 }
  0xee   : > { %771 = vst.msk [vmem:[%s1143_s29 + $0x48] sm:$0xf] %vm752_vm1, %v938_v41  ;;  %v469_v49 = vadd.f32 %v1132_v19, %v468_v39  ;;  %v999_v51 = vpop.f32.mrb[4].mxu1  ;;  %753 = vst.msk [vmem:[%s1143_s29] sm:$0xf] %vm752_vm1, %v920_v44  ;;  %v595_v52 = vsel %vm531_vm6, %v413_v36, %v563_v46  ;;  %v426_v53 = vadd.f32 %v983_v50, %v1132_v19  ;;  %v417_v55 = vpop.f32.mrb[5].mxu0 }
  0xef   : > { %769 = vst.msk [vmem:[%s1143_s29 + $0x40] sm:$0xf] %vm752_vm1, %v936_v45  ;;  %v490_v54 = vadd.f32 %v999_v51, %v1132_v19  ;;  %v481_v56 = vpop.f32.mrb[5].mxu1  ;;  %v923_v57 = vpack.c.bf16 %v595_v52, %v595_v52  ;;  %v611_v58 = vsel %vm547_vm7, %v477_v37, %v579_v47  ;;  %vm529_vm8 = vcmp.ge.f32.partialorder %v405_v48, 0.0  ;;  %v984_v60 = vpop.f32.mrb[6].mxu0 }
  0xf0   : > { %v561_v59 = vmul.f32 0.2, %v405_v48  ;;  %v1000_v61 = vpop.f32.mrb[6].mxu1  ;;  %v939_v62 = vpack.c.bf16 %v611_v58, %v611_v58  ;;  %vm545_vm9 = vcmp.ge.f32.partialorder %v469_v49, 0.0  ;;  %v577_v63 = vmul.f32 0.2, %v469_v49 }
  0xf1   : > { %vm534_vm10 = vcmp.ge.f32.partialorder %v426_v53, 0.0  ;;  %v420_v0 = vpop.f32.mrb[7].mxu0  ;;  %v484_v1 = vpop.f32.mrb[7].mxu1  ;;  %756 = vst.msk [vmem:[%s1143_s29 + $0xc] sm:$0xf] %vm752_vm1, %v923_v57  ;;  %vm550_vm11 = vcmp.ge.f32.partialorder %v490_v54, 0.0  ;;  %v418_v7 = vadd.f32 %v1132_v19, %v417_v55  ;;  %v482_v8 = vadd.f32 %v1132_v19, %v481_v56 }
  0xf2   : > { %v593_v2 = vsel %vm529_vm8, %v405_v48, %v561_v59  ;;  %v566_v3 = vmul.f32 0.2, %v426_v53  ;;  %v582_v4 = vmul.f32 0.2, %v490_v54  ;;  %772 = vst.msk [vmem:[%s1143_s29 + $0x4c] sm:$0xf] %vm752_vm1, %v939_v62  ;;  %v609_v6 = vsel %vm545_vm9, %v469_v49, %v577_v63 }
  0xf3   : > { %v921_v5 = vpack.c.bf16 %v593_v2, %v593_v2  ;;  %v937_v9 = vpack.c.bf16 %v609_v6, %v609_v6  ;;  %v429_v12 = vadd.f32 %v984_v60, %v1132_v19  ;;  %vm532_vm12 = vcmp.ge.f32.partialorder %v418_v7, 0.0 }
  0xf4   : > { %v598_v10 = vsel %vm534_vm10, %v426_v53, %v566_v3  ;;  %v614_v11 = vsel %vm550_vm11, %v490_v54, %v582_v4  ;;  %v564_v15 = vmul.f32 0.2, %v418_v7  ;;  %vm548_vm13 = vcmp.ge.f32.partialorder %v482_v8, 0.0 }
  0xf5   : > { %754 = vst.msk [vmem:[%s1143_s29 + $0x4] sm:$0xf] %vm752_vm1, %v921_v5  ;;  %v926_v13 = vpack.c.bf16 %v598_v10, %v598_v10  ;;  %v942_v14 = vpack.c.bf16 %v614_v11, %v614_v11  ;;  %770 = vst.msk [vmem:[%s1143_s29 + $0x44] sm:$0xf] %vm752_vm1, %v937_v9  ;;  %v580_v16 = vmul.f32 0.2, %v482_v8  ;;  %v493_v20 = vadd.f32 %v1000_v61, %v1132_v19 }
  0xf6   : > { %vm535_vm14 = vcmp.ge.f32.partialorder %v429_v12, 0.0  ;;  %v567_v17 = vmul.f32 0.2, %v429_v12  ;;  %v596_v18 = vsel %vm532_vm12, %v418_v7, %v564_v15  ;;  %v421_v21 = vadd.f32 %v1132_v19, %v420_v0  ;;  %v987_v23 = vpop.f32.mrb[8].mxu0  ;;  %v1003_v24 = vpop.f32.mrb[8].mxu1 }
  0xf7   : > { %759 = vst.msk [vmem:[%s1143_s29 + $0x18] sm:$0xf] %vm752_vm1, %v926_v13  ;;  %775 = vst.msk [vmem:[%s1143_s29 + $0x58] sm:$0xf] %vm752_vm1, %v942_v14  ;;  %v485_v22 = vadd.f32 %v1132_v19, %v484_v1  ;;  %v924_v25 = vpack.c.bf16 %v596_v18, %v596_v18  ;;  %v612_v26 = vsel %vm548_vm13, %v482_v8, %v580_v16  ;;  %v433_v29 = vpop.f32.mrb[9].mxu0  ;;  %v497_v30 = vpop.f32.mrb[9].mxu1 }
  0xf8   : > { %v599_v27 = vsel %vm535_vm14, %v429_v12, %v567_v17  ;;  %v442_v28 = vadd.f32 %v987_v23, %v1132_v19  ;;  %v940_v31 = vpack.c.bf16 %v612_v26, %v612_v26  ;;  %vm551_vm15 = vcmp.ge.f32.partialorder %v493_v20, 0.0  ;;  %v988_v34 = vpop.f32.mrb[10].mxu0  ;;  %v1004_v35 = vpop.f32.mrb[10].mxu1 }
  0xf9   : > { %v927_v32 = vpack.c.bf16 %v599_v27, %v599_v27  ;;  %v583_v33 = vmul.f32 0.2, %v493_v20  ;;  %757 = vst.msk [vmem:[%s1143_s29 + $0x10] sm:$0xf] %vm752_vm1, %v924_v25  ;;  %vm533_vm0 = vcmp.ge.f32.partialorder %v421_v21, 0.0  ;;  %vm549_vm2 = vcmp.ge.f32.partialorder %v485_v22, 0.0 }
  0xfa   : > { %v565_v36 = vmul.f32 0.2, %v421_v21  ;;  %v581_v37 = vmul.f32 0.2, %v485_v22  ;;  %773 = vst.msk [vmem:[%s1143_s29 + $0x50] sm:$0xf] %vm752_vm1, %v940_v31  ;;  %v506_v40 = vadd.f32 %v1003_v24, %v1132_v19  ;;  %v434_v46 = vadd.f32 %v1132_v19, %v433_v29 }
  0xfb   : > { %760 = vst.msk [vmem:[%s1143_s29 + $0x1c] sm:$0xf] %vm752_vm1, %v927_v32  ;;  %v615_v38 = vsel %vm551_vm15, %v493_v20, %v583_v33  ;;  %vm538_vm3 = vcmp.ge.f32.partialorder %v442_v28, 0.0  ;;  %v570_v39 = vmul.f32 0.2, %v442_v28  ;;  %v436_v41 = vpop.f32.mrb[11].mxu0  ;;  %v498_v54 = vadd.f32 %v1132_v19, %v497_v30 }
  0xfc   : > { %v500_v42 = vpop.f32.mrb[11].mxu1  ;;  %v943_v43 = vpack.c.bf16 %v615_v38, %v615_v38  ;;  %v597_v44 = vsel %vm533_vm0, %v421_v21, %v565_v36  ;;  %v613_v45 = vsel %vm549_vm2, %v485_v22, %v581_v37  ;;  %vm554_vm4 = vcmp.ge.f32.partialorder %v506_v40, 0.0 }
  0xfd   : > { %v925_v47 = vpack.c.bf16 %v597_v44, %v597_v44  ;;  %v941_v48 = vpack.c.bf16 %v613_v45, %v613_v45  ;;  %v602_v49 = vsel %vm538_vm3, %v442_v28, %v570_v39  ;;  %v586_v51 = vmul.f32 0.2, %v506_v40  ;;  %v991_v53 = vpop.f32.mrb[12].mxu0 }
  0xfe   : > { %776 = vst.msk [vmem:[%s1143_s29 + $0x5c] sm:$0xf] %vm752_vm1, %v943_v43  ;;  %v930_v50 = vpack.c.bf16 %v602_v49, %v602_v49  ;;  %vm536_vm5 = vcmp.ge.f32.partialorder %v434_v46, 0.0  ;;  %v568_v52 = vmul.f32 0.2, %v434_v46  ;;  %v445_v55 = vadd.f32 %v988_v34, %v1132_v19  ;;  %v1007_v58 = vpop.f32.mrb[12].mxu1 }
  0xff   : > { %758 = vst.msk [vmem:[%s1143_s29 + $0x14] sm:$0xf] %vm752_vm1, %v925_v47  ;;  %774 = vst.msk [vmem:[%s1143_s29 + $0x54] sm:$0xf] %vm752_vm1, %v941_v48  ;;  %v509_v56 = vadd.f32 %v1004_v35, %v1132_v19  ;;  %v437_v57 = vadd.f32 %v1132_v19, %v436_v41  ;;  %v449_v59 = vpop.f32.mrb[13].mxu0  ;;  %v618_v60 = vsel %vm554_vm4, %v506_v40, %v586_v51  ;;  %v513_v0 = vpop.f32.mrb[13].mxu1 }
 0x100   : > { %763 = vst.msk [vmem:[%s1143_s29 + $0x28] sm:$0xf] %vm752_vm1, %v930_v50  ;;  %v600_v61 = vsel %vm536_vm5, %v434_v46, %v568_v52  ;;  %v501_v62 = vadd.f32 %v1132_v19, %v500_v42  ;;  %v458_v63 = vadd.f32 %v991_v53, %v1132_v19  ;;  %v992_v1 = vpop.f32.mrb[14].mxu0  ;;  %v946_v2 = vpack.c.bf16 %v618_v60, %v618_v60  ;;  %v1008_v5 = vpop.f32.mrb[14].mxu1 }
 0x101   : > { %v928_v3 = vpack.c.bf16 %v600_v61, %v600_v61  ;;  %vm552_vm6 = vcmp.ge.f32.partialorder %v498_v54, 0.0  ;;  %v584_v4 = vmul.f32 0.2, %v498_v54  ;;  %v452_v6 = vpop.f32.mrb[15].mxu0  ;;  %vm539_vm7 = vcmp.ge.f32.partialorder %v445_v55, 0.0  ;;  %v516_v11 = vpop.f32.mrb[15].mxu1 }
 0x102   : > { %v571_v7 = vmul.f32 0.2, %v445_v55  ;;  %vm555_vm8 = vcmp.ge.f32.partialorder %v509_v56, 0.0  ;;  %v587_v8 = vmul.f32 0.2, %v509_v56  ;;  %vm537_vm9 = vcmp.ge.f32.partialorder %v437_v57, 0.0 }
 0x103   : > { %779 = vst.msk [vmem:[%s1143_s29 + $0x68] sm:$0xf] %vm752_vm1, %v946_v2  ;;  %761 = vst.msk [vmem:[%s1143_s29 + $0x20] sm:$0xf] %vm752_vm1, %v928_v3  ;;  %v616_v9 = vsel %vm552_vm6, %v498_v54, %v584_v4  ;;  %v569_v10 = vmul.f32 0.2, %v437_v57  ;;  %v522_v23 = vadd.f32 %v1007_v58, %v1132_v19  ;;  %v450_v25 = vadd.f32 %v1132_v19, %v449_v59 }
 0x104   : > { %vm553_vm10 = vcmp.ge.f32.partialorder %v501_v62, 0.0  ;;  %v944_v12 = vpack.c.bf16 %v616_v9, %v616_v9  ;;  %v603_v13 = vsel %vm539_vm7, %v445_v55, %v571_v7  ;;  %v619_v14 = vsel %vm555_vm8, %v509_v56, %v587_v8 }
 0x105   : > { %v585_v15 = vmul.f32 0.2, %v501_v62  ;;  %v931_v16 = vpack.c.bf16 %v603_v13, %v603_v13  ;;  %v947_v17 = vpack.c.bf16 %v619_v14, %v619_v14  ;;  %v601_v18 = vsel %vm537_vm9, %v437_v57, %v569_v10 }
 0x106   : > { %vm542_vm11 = vcmp.ge.f32.partialorder %v458_v63, 0.0  ;;  %777 = vst.msk [vmem:[%s1143_s29 + $0x60] sm:$0xf] %vm752_vm1, %v944_v12  ;;  %v929_v20 = vpack.c.bf16 %v601_v18, %v601_v18  ;;  %v574_v22 = vmul.f32 0.2, %v458_v63  ;;  %v514_v26 = vadd.f32 %v1132_v19, %v513_v0 }
 0x107   : > { %v617_v21 = vsel %vm553_vm10, %v501_v62, %v585_v15  ;;  %764 = vst.msk [vmem:[%s1143_s29 + $0x2c] sm:$0xf] %vm752_vm1, %v931_v16  ;;  %780 = vst.msk [vmem:[%s1143_s29 + $0x6c] sm:$0xf] %vm752_vm1, %v947_v17  ;;  %v461_v27 = vadd.f32 %v992_v1, %v1132_v19  ;;  %vm558_vm12 = vcmp.ge.f32.partialorder %v522_v23, 0.0  ;;  %v525_v30 = vadd.f32 %v1008_v5, %v1132_v19 }
 0x108   : > { %v945_v24 = vpack.c.bf16 %v617_v21, %v617_v21  ;;  %762 = vst.msk [vmem:[%s1143_s29 + $0x24] sm:$0xf] %vm752_vm1, %v929_v20  ;;  %v606_v28 = vsel %vm542_vm11, %v458_v63, %v574_v22  ;;  %v590_v29 = vmul.f32 0.2, %v522_v23  ;;  %vm540_vm13 = vcmp.ge.f32.partialorder %v450_v25, 0.0 }
 0x109   : > { %v934_v31 = vpack.c.bf16 %v606_v28, %v606_v28  ;;  %v572_v32 = vmul.f32 0.2, %v450_v25  ;;  %vm556_vm14 = vcmp.ge.f32.partialorder %v514_v26, 0.0  ;;  %v588_v34 = vmul.f32 0.2, %v514_v26 }
 0x10a   : > { %778 = vst.msk [vmem:[%s1143_s29 + $0x64] sm:$0xf] %vm752_vm1, %v945_v24  ;;  %v622_v33 = vsel %vm558_vm12, %v522_v23, %v590_v29  ;;  %vm543_vm15 = vcmp.ge.f32.partialorder %v461_v27, 0.0  ;;  %v575_v35 = vmul.f32 0.2, %v461_v27  ;;  %vm559_vm0 = vcmp.ge.f32.partialorder %v525_v30, 0.0 }
 0x10b   : > { %767 = vst.msk [vmem:[%s1143_s29 + $0x38] sm:$0xf] %vm752_vm1, %v934_v31  ;;  %v950_v36 = vpack.c.bf16 %v622_v33, %v622_v33  ;;  %v604_v37 = vsel %vm540_vm13, %v450_v25, %v572_v32  ;;  %v591_v38 = vmul.f32 0.2, %v525_v30  ;;  %v620_v40 = vsel %vm556_vm14, %v514_v26, %v588_v34 }
 0x10c   : > { %v932_v39 = vpack.c.bf16 %v604_v37, %v604_v37  ;;  %v607_v41 = vsel %vm543_vm15, %v461_v27, %v575_v35  ;;  %v453_v42 = vadd.f32 %v1132_v19, %v452_v6  ;;  %v948_v43 = vpack.c.bf16 %v620_v40, %v620_v40 }
 0x10d   : > { %783 = vst.msk [vmem:[%s1143_s29 + $0x78] sm:$0xf] %vm752_vm1, %v950_v36  ;;  %v935_v44 = vpack.c.bf16 %v607_v41, %v607_v41  ;;  %v623_v45 = vsel %vm559_vm0, %v525_v30, %v591_v38  ;;  %v517_v46 = vadd.f32 %v1132_v19, %v516_v11 }
 0x10e   : > { %765 = vst.msk [vmem:[%s1143_s29 + $0x30] sm:$0xf] %vm752_vm1, %v932_v39  ;;  %v951_v47 = vpack.c.bf16 %v623_v45, %v623_v45  ;;  %vm541_vm2 = vcmp.ge.f32.partialorder %v453_v42, 0.0  ;;  %v573_v48 = vmul.f32 0.2, %v453_v42 }
 0x10f   : > { %781 = vst.msk [vmem:[%s1143_s29 + $0x70] sm:$0xf] %vm752_vm1, %v948_v43  ;;  %768 = vst.msk [vmem:[%s1143_s29 + $0x3c] sm:$0xf] %vm752_vm1, %v935_v44  ;;  %vm557_vm3 = vcmp.ge.f32.partialorder %v517_v46, 0.0 }
 0x110   : > { %v589_v49 = vmul.f32 0.2, %v517_v46  ;;  %784 = vst.msk [vmem:[%s1143_s29 + $0x7c] sm:$0xf] %vm752_vm1, %v951_v47  ;;  %v605_v50 = vsel %vm541_vm2, %v453_v42, %v573_v48 }
 0x111   : > { %v933_v51 = vpack.c.bf16 %v605_v50, %v605_v50 }
 0x112   : > { %v621_v52 = vsel %vm557_vm3, %v517_v46, %v589_v49 }
 0x113   : > { %v949_v53 = vpack.c.bf16 %v621_v52, %v621_v52  ;;  %766 = vst.msk [vmem:[%s1143_s29 + $0x34] sm:$0xf] %vm752_vm1, %v933_v51 }
 0x115   : > { %782 = vst.msk [vmem:[%s1143_s29 + $0x74] sm:$0xf] %vm752_vm1, %v949_v53 }
 0x116 PF: > { %s13_s12 = sadd.s32 1, %s1048_s12  }
 0x117   : > { %p10_p4 = scmp.ge.s32.totalorder %s13_s12, 4  }
 0x119   :  { %12 = sbr.rel (!%p10_p4) target bundleno = 1 (0x1), region = 62 }

// kernel: discriminator_forward.6
= control target key start
LH: loop header
LB: loop body
LE: loop exit
PB: predicated region body
PF: predicated region fallthrough
CT: control target
= control target key end

     0   :  { %vm247_vm0 = vcmask 130048   ;;  %s910_s1 = inlined_call_operand.vmem [shape: bf16[128,16], index: 1, kind: input, shape index: {}]   ;;  %s911_s0 = inlined_call_operand.vmem [shape: bf16[128,128], index: 0, kind: input, shape index: {}]   ;;  %s912_s2 = inlined_call_operand.vmem [shape: f32[1,16], index: 2, kind: input, shape index: {}]   ;;  %s913_s3 = inlined_call_operand.vmem [shape: bf16[128,16], index: 3, kind: output, shape index: {}]  }
   0x1   :  { %v621_v0 = vld [vmem:[%s910_s1] sm:$0xff]   ;;  %v622_v1 = vld [vmem:[%s910_s1 + $0x8] sm:$0xff]   ;;  %v623_v2 = vld [vmem:[%s910_s1 + $0x10] sm:$0xff]  }
   0x2   :  { %573 = vmatprep.subr.bf16.mxu0 %v621_v0  ;;  %605 = vmatprep.subr.bf16.mxu1 %v621_v0  ;;  %v624_v3 = vld [vmem:[%s910_s1 + $0x18] sm:$0xff]   ;;  %v629_v4 = vld [vmem:[%s911_s0] sm:$0xff]   ;;  %v626_v7 = vld [vmem:[%s910_s1 + $0x28] sm:$0xff]  }
   0x3   :  { %574 = vmatpush3.bf16.msra.mxu0 %v621_v0  ;;  %613 = vmatpush3.bf16.msra.mxu1 %v621_v0  ;;  %v625_v5 = vld [vmem:[%s910_s1 + $0x20] sm:$0xff]   ;;  %v627_v8 = vld [vmem:[%s910_s1 + $0x30] sm:$0xff]   ;;  %v628_v9 = vld [vmem:[%s910_s1 + $0x38] sm:$0xff]  }
   0x4   :  { %575 = vmatprep.subr.bf16.mxu0 %v622_v1  ;;  %606 = vmatprep.subr.bf16.mxu1 %v622_v1  ;;  %v633_v6 = vld [vmem:[%s911_s0 + $0x20] sm:$0xff]   ;;  %v630_v10 = vld [vmem:[%s911_s0 + $0x8] sm:$0xff]   ;;  %v631_v12 = vld [vmem:[%s911_s0 + $0x10] sm:$0xff]  }
   0x5   :  { %589 = vmatprep.mubr.bf16.mxu0 %v629_v4  ;;  %597 = vmatprep.mubr.bf16.mxu1 %v633_v6  ;;  %v634_v11 = vld [vmem:[%s911_s0 + $0x28] sm:$0xff]   ;;  %v635_v13 = vld [vmem:[%s911_s0 + $0x30] sm:$0xff]   ;;  %v632_v14 = vld [vmem:[%s911_s0 + $0x18] sm:$0xff]  }
   0x6   :  { %v636_v15 = vld [vmem:[%s911_s0 + $0x38] sm:$0xff]   ;;  %v508_v16 = vld [vmem:[%s912_s2] ss:$0 sm:$0xff] }
   0x7   :  { %576 = vmatpush3.bf16.msra.mxu0 %v622_v1  ;;  %614 = vmatpush3.bf16.msra.mxu1 %v622_v1 }
   0x8   :  { %577 = vmatprep.subr.bf16.mxu0 %v623_v2  ;;  %607 = vmatprep.subr.bf16.mxu1 %v623_v2 }
   0xb   :  { %578 = vmatpush3.bf16.msra.mxu0 %v623_v2  ;;  %615 = vmatpush3.bf16.msra.mxu1 %v623_v2 }
   0xc   :  { %579 = vmatprep.subr.bf16.mxu0 %v624_v3  ;;  %608 = vmatprep.subr.bf16.mxu1 %v624_v3 }
   0xf   :  { %580 = vmatpush3.bf16.msra.mxu0 %v624_v3  ;;  %616 = vmatpush3.bf16.msra.mxu1 %v624_v3 }
  0x10   :  { %581 = vmatprep.subr.bf16.mxu0 %v625_v5  ;;  %609 = vmatprep.subr.bf16.mxu1 %v625_v5 }
  0x13   :  { %582 = vmatpush3.bf16.msra.mxu0 %v625_v5  ;;  %617 = vmatpush3.bf16.msra.mxu1 %v625_v5 }
  0x14   :  { %583 = vmatprep.subr.bf16.mxu0 %v626_v7  ;;  %610 = vmatprep.subr.bf16.mxu1 %v626_v7 }
  0x17   :  { %584 = vmatpush3.bf16.msra.mxu0 %v626_v7  ;;  %618 = vmatpush3.bf16.msra.mxu1 %v626_v7 }
  0x18   :  { %585 = vmatprep.subr.bf16.mxu0 %v627_v8  ;;  %611 = vmatprep.subr.bf16.mxu1 %v627_v8 }
  0x1b   :  { %586 = vmatpush3.bf16.msra.mxu0 %v627_v8  ;;  %619 = vmatpush3.bf16.msra.mxu1 %v627_v8 }
  0x1c   :  { %587 = vmatprep.subr.bf16.mxu0 %v628_v9  ;;  %612 = vmatprep.subr.bf16.mxu1 %v628_v9 }
  0x1f   :  { %588 = vmatpush3.bf16.msra.mxu0 %v628_v9  ;;  %620 = vmatpush3.bf16.msra.mxu1 %v628_v9 }
  0x22   :  { %590 = vmatmul.mubr.bf16.vlgmr.msra.gmra.mrb[0].mxu0 %v630_v10  ;;  %598 = vmatmul.mubr.bf16.vlgmr.msra.gmra.mrb[0].mxu1 %v634_v11 }
  0x23   :  { %593 = vmatprep.mubr.bf16.mxu0 %v631_v12  ;;  %601 = vmatprep.mubr.bf16.mxu1 %v635_v13 }
  0x2a   :  { %594 = vmatmul.mubr.bf16.gmra.mrb[4].mxu0 %v632_v14  ;;  %602 = vmatmul.mubr.bf16.gmra.mrb[4].mxu1 %v636_v15 }
  0xf5   :  { %v591_v17 = vpop.f32.mrb[0].mxu0  ;;  %v599_v18 = vpop.f32.mrb[0].mxu1 }
  0xf6   :  { %v184_v19 = vpop.f32.mrb[1].mxu0  ;;  %v216_v20 = vpop.f32.mrb[1].mxu1  ;;  %v712_v26 = vadd.f32 %v591_v17, %v508_v16  ;;  %v225_v59 = vadd.f32 %v599_v18, %v508_v16 }
  0xf7   :  { %v710_v21 = vadd.f32 %v508_v16, %v184_v19  ;;  %v592_v22 = vpop.f32.mrb[2].mxu0  ;;  %v600_v23 = vpop.f32.mrb[2].mxu1  ;;  %v217_v51 = vadd.f32 %v508_v16, %v216_v20 }
  0xf8   :  { %v187_v24 = vpop.f32.mrb[3].mxu0  ;;  %v219_v25 = vpop.f32.mrb[3].mxu1  ;;  %v196_v29 = vadd.f32 %v592_v22, %v508_v16  ;;  %v251_v32 = vsel %vm247_vm0, %v712_v26, 0.0  ;;  %v228_v61 = vadd.f32 %v600_v23, %v508_v16  ;;  %v267_v1 = vsel %vm247_vm0, %v225_v59, 0.0 }
  0xf9   :  { %v188_v27 = vadd.f32 %v508_v16, %v187_v24  ;;  %v248_v28 = vsel %vm247_vm0, %v710_v21, 0.0  ;;  %v263_v56 = vsel %vm247_vm0, %v217_v51, 0.0  ;;  %v220_v57 = vadd.f32 %v508_v16, %v219_v25 }
  0xfa   :  { %v253_v38 = vsel %vm247_vm0, %v196_v29, 0.0  ;;  %v269_v3 = vsel %vm247_vm0, %v228_v61, 0.0 }
  0xfb   :  { %v249_v30 = vsel %vm247_vm0, %v188_v27, 0.0  ;;  %v265_v62 = vsel %vm247_vm0, %v220_v57, 0.0 }
  0xfc   :  { %v250_v31 = vadd.f32 %v249_v30, %v248_v28 }
  0xfd   :  { %v595_v33 = vpop.f32.mrb[4].mxu0  ;;  %v603_v34 = vpop.f32.mrb[4].mxu1 }
  0xfe   :  { %v252_v35 = vadd.f32 %v251_v32, %v250_v31  ;;  %v200_v36 = vpop.f32.mrb[5].mxu0  ;;  %v232_v37 = vpop.f32.mrb[5].mxu1  ;;  %v209_v45 = vadd.f32 %v595_v33, %v508_v16  ;;  %v241_v7 = vadd.f32 %v603_v34, %v508_v16 }
  0xff   :  { %v201_v39 = vadd.f32 %v508_v16, %v200_v36  ;;  %v596_v40 = vpop.f32.mrb[6].mxu0  ;;  %v604_v41 = vpop.f32.mrb[6].mxu1  ;;  %v233_v63 = vadd.f32 %v508_v16, %v232_v37 }
 0x100   :  { %v254_v42 = vadd.f32 %v253_v38, %v252_v35  ;;  %v203_v43 = vpop.f32.mrb[7].mxu0  ;;  %v235_v44 = vpop.f32.mrb[7].mxu1  ;;  %v212_v49 = vadd.f32 %v596_v40, %v508_v16  ;;  %v259_v53 = vsel %vm247_vm0, %v209_v45, 0.0  ;;  %v244_v9 = vadd.f32 %v604_v41, %v508_v16 }
 0x101   :  { %v255_v46 = vsel %vm247_vm0, %v201_v39, 0.0  ;;  %v204_v47 = vadd.f32 %v508_v16, %v203_v43  ;;  %v271_v4 = vsel %vm247_vm0, %v233_v63, 0.0  ;;  %v236_v5 = vadd.f32 %v508_v16, %v235_v44 }
 0x102   :  { %v256_v48 = vadd.f32 %v255_v46, %v254_v42  ;;  %v261_v55 = vsel %vm247_vm0, %v212_v49, 0.0  ;;  %v275_v12 = vsel %vm247_vm0, %v241_v7, 0.0  ;;  %v277_v14 = vsel %vm247_vm0, %v244_v9, 0.0 }
 0x103   :  { %v257_v50 = vsel %vm247_vm0, %v204_v47, 0.0  ;;  %v273_v10 = vsel %vm247_vm0, %v236_v5, 0.0 }
 0x104   :  { %v258_v52 = vadd.f32 %v257_v50, %v256_v48 }
 0x106   :  { %v260_v54 = vadd.f32 %v259_v53, %v258_v52 }
 0x108   :  { %v262_v58 = vadd.f32 %v261_v55, %v260_v54 }
 0x10a   :  { %v264_v60 = vadd.f32 %v263_v56, %v262_v58 }
 0x10c   :  { %v266_v0 = vadd.f32 %v265_v62, %v264_v60 }
 0x10e   :  { %v268_v2 = vadd.f32 %v267_v1, %v266_v0 }
 0x110   :  { %v270_v6 = vadd.f32 %v269_v3, %v268_v2 }
 0x112   :  { %v272_v8 = vadd.f32 %v271_v4, %v270_v6 }
 0x114   :  { %v274_v11 = vadd.f32 %v273_v10, %v272_v8 }
 0x116   :  { %v276_v13 = vadd.f32 %v275_v12, %v274_v11 }
 0x118   :  { %v278_v15 = vadd.f32 %v277_v14, %v276_v13 }
 0x11a   :  { %v279_v17 = vrot.slane %v278_v15, 4 }
 0x11c   :  { %v280_v18 = vadd.f32 %v279_v17, %v278_v15 }
 0x11e   :  { %v281_v19 = vrot.slane %v280_v18, 2 }
 0x120   :  { %v282_v20 = vadd.f32 %v281_v19, %v280_v18 }
 0x122   :  { %v283_v22 = vrot.slane %v282_v20, 1 }
 0x124   :  { %v284_v23 = vadd.f32 %v283_v22, %v282_v20 }
 0x126   :  { %v286_v24 = vmul.f32 0.0078125, %v284_v23 }
 0x128   :  { %v733_v25 = vsub.f32 %v710_v21, %v286_v24  ;;  %v735_v16 = vsub.f32 %v188_v27, %v286_v24  ;;  %v738_v28 = vsub.f32 %v712_v26, %v286_v24  ;;  %v740_v30 = vsub.f32 %v196_v29, %v286_v24 }
 0x129   :  { %v742_v31 = vsub.f32 %v201_v39, %v286_v24  ;;  %v744_v32 = vsub.f32 %v204_v47, %v286_v24  ;;  %v746_v33 = vsub.f32 %v209_v45, %v286_v24  ;;  %v748_v34 = vsub.f32 %v212_v49, %v286_v24 }
 0x12a   :  { %v750_v35 = vsub.f32 %v217_v51, %v286_v24  ;;  %v752_v36 = vsub.f32 %v220_v57, %v286_v24  ;;  %v754_v21 = vsub.f32 %v225_v59, %v286_v24  ;;  %v756_v27 = vsub.f32 %v228_v61, %v286_v24 }
 0x12b   :  { %v758_v26 = vsub.f32 %v233_v63, %v286_v24  ;;  %v760_v29 = vsub.f32 %v236_v5, %v286_v24  ;;  %v762_v37 = vsub.f32 %v241_v7, %v286_v24  ;;  %v764_v38 = vsub.f32 %v244_v9, %v286_v24 }
 0x12c   :  { %v303_v39 = vmul.f32 %v733_v25, %v733_v25  ;;  %v304_v40 = vmul.f32 %v735_v16, %v735_v16  ;;  %v305_v41 = vmul.f32 %v738_v28, %v738_v28  ;;  %v312_v42 = vmul.f32 %v752_v36, %v752_v36 }
 0x12d   :  { %v313_v43 = vmul.f32 %v754_v21, %v754_v21  ;;  %v306_v44 = vmul.f32 %v740_v30, %v740_v30  ;;  %v314_v45 = vmul.f32 %v756_v27, %v756_v27  ;;  %v315_v46 = vmul.f32 %v758_v26, %v758_v26 }
 0x12e   :  { %v316_v47 = vmul.f32 %v760_v29, %v760_v29  ;;  %v317_v48 = vmul.f32 %v762_v37, %v762_v37  ;;  %v318_v49 = vmul.f32 %v764_v38, %v764_v38  ;;  %v319_v50 = vsel %vm247_vm0, %v303_v39, 0.0 }
 0x12f   :  { %v320_v51 = vsel %vm247_vm0, %v304_v40, 0.0  ;;  %v307_v53 = vmul.f32 %v742_v31, %v742_v31  ;;  %v322_v54 = vsel %vm247_vm0, %v305_v41, 0.0  ;;  %v336_v55 = vsel %vm247_vm0, %v312_v42, 0.0 }
 0x130   :  { %v321_v52 = vadd.f32 %v320_v51, %v319_v50  ;;  %v338_v56 = vsel %vm247_vm0, %v313_v43, 0.0  ;;  %v340_v58 = vsel %vm247_vm0, %v314_v45, 0.0  ;;  %v342_v59 = vsel %vm247_vm0, %v315_v46, 0.0 }
 0x131   :  { %v344_v60 = vsel %vm247_vm0, %v316_v47, 0.0  ;;  %v308_v61 = vmul.f32 %v744_v32, %v744_v32  ;;  %v324_v62 = vsel %vm247_vm0, %v306_v44, 0.0  ;;  %v346_v63 = vsel %vm247_vm0, %v317_v48, 0.0 }
 0x132   :  { %v323_v57 = vadd.f32 %v322_v54, %v321_v52  ;;  %v348_v0 = vsel %vm247_vm0, %v318_v49, 0.0  ;;  %v309_v2 = vmul.f32 %v746_v33, %v746_v33  ;;  %v326_v3 = vsel %vm247_vm0, %v307_v53, 0.0 }
 0x133   :  { %v310_v5 = vmul.f32 %v748_v34, %v748_v34  ;;  %v328_v6 = vsel %vm247_vm0, %v308_v61, 0.0  ;;  %v311_v8 = vmul.f32 %v750_v35, %v750_v35 }
 0x134   :  { %v325_v1 = vadd.f32 %v324_v62, %v323_v57  ;;  %v330_v9 = vsel %vm247_vm0, %v309_v2, 0.0 }
 0x135   :  { %v332_v11 = vsel %vm247_vm0, %v310_v5, 0.0  ;;  %v334_v13 = vsel %vm247_vm0, %v311_v8, 0.0 }
 0x136   :  { %v327_v4 = vadd.f32 %v326_v3, %v325_v1 }
 0x138   :  { %v329_v7 = vadd.f32 %v328_v6, %v327_v4 }
 0x13a   :  { %v331_v10 = vadd.f32 %v330_v9, %v329_v7 }
 0x13c   :  { %v333_v12 = vadd.f32 %v332_v11, %v331_v10 }
 0x13e   :  { %v335_v14 = vadd.f32 %v334_v13, %v333_v12 }
 0x140   :  { %v337_v15 = vadd.f32 %v336_v55, %v335_v14 }
 0x142   :  { %v339_v17 = vadd.f32 %v338_v56, %v337_v15 }
 0x144   :  { %v341_v18 = vadd.f32 %v340_v58, %v339_v17 }
 0x146   :  { %v343_v19 = vadd.f32 %v342_v59, %v341_v18 }
 0x148   :  { %v345_v20 = vadd.f32 %v344_v60, %v343_v19 }
 0x14a   :  { %v347_v22 = vadd.f32 %v346_v63, %v345_v20 }
 0x14c   :  { %v349_v23 = vadd.f32 %v348_v0, %v347_v22 }
 0x14e   :  { %v350_v24 = vrot.slane %v349_v23, 4 }
 0x150   :  { %v351_v39 = vadd.f32 %v350_v24, %v349_v23 }
 0x152   :  { %v352_v40 = vrot.slane %v351_v39, 2 }
 0x154   :  { %v353_v41 = vadd.f32 %v352_v40, %v351_v39 }
 0x156   :  { %v354_v42 = vrot.slane %v353_v41, 1 }
 0x158   :  { %v355_v43 = vadd.f32 %v354_v42, %v353_v41 }
 0x15a   :  { %v356_v44 = vmul.f32 0.0078125, %v355_v43 }
 0x15c   :  { %v357_v45 = vadd.f32 1e-05, %v356_v44 }
 0x15e   :  { %637 = vrsqrt.f32 %v357_v45 }
 0x168   :  { %v638_v46 = vpop.eup %637 }
 0x169   :  { %v359_v47 = vmul.f32 %v638_v46, %v733_v25  ;;  %v360_v48 = vmul.f32 %v638_v46, %v735_v16  ;;  %v361_v49 = vmul.f32 %v638_v46, %v738_v28  ;;  %v362_v50 = vmul.f32 %v638_v46, %v740_v30 }
 0x16a   :  { %v363_v51 = vmul.f32 %v638_v46, %v742_v31  ;;  %v364_v52 = vmul.f32 %v638_v46, %v744_v32  ;;  %v365_v53 = vmul.f32 %v638_v46, %v746_v33  ;;  %v366_v54 = vmul.f32 %v638_v46, %v748_v34 }
 0x16b   :  { %v367_v55 = vmul.f32 %v638_v46, %v750_v35  ;;  %v368_v56 = vmul.f32 %v638_v46, %v752_v36  ;;  %v369_v25 = vmul.f32 %v638_v46, %v754_v21  ;;  %v370_v16 = vmul.f32 %v638_v46, %v756_v27 }
 0x16c   :  { %v371_v28 = vmul.f32 %v638_v46, %v758_v26  ;;  %v372_v30 = vmul.f32 %v638_v46, %v760_v29  ;;  %v373_v31 = vmul.f32 %v638_v46, %v762_v37  ;;  %v374_v32 = vmul.f32 %v638_v46, %v764_v38 }
 0x16d   :  { %vm376_vm2 = vcmp.ge.f32.partialorder %v360_v48, 0.0  ;;  %vm377_vm3 = vcmp.ge.f32.partialorder %v361_v49, 0.0  ;;  %vm378_vm4 = vcmp.ge.f32.partialorder %v362_v50, 0.0  ;;  %vm379_vm5 = vcmp.ge.f32.partialorder %v363_v51, 0.0 }
 0x16e   :  { %vm380_vm6 = vcmp.ge.f32.partialorder %v364_v52, 0.0  ;;  %vm382_vm8 = vcmp.ge.f32.partialorder %v366_v54, 0.0  ;;  %vm383_vm9 = vcmp.ge.f32.partialorder %v367_v55, 0.0  ;;  %vm384_vm10 = vcmp.ge.f32.partialorder %v368_v56, 0.0 }
 0x16f   :  { %vm385_vm11 = vcmp.ge.f32.partialorder %v369_v25, 0.0  ;;  %vm386_vm12 = vcmp.ge.f32.partialorder %v370_v16, 0.0  ;;  %vm387_vm13 = vcmp.ge.f32.partialorder %v371_v28, 0.0  ;;  %vm388_vm14 = vcmp.ge.f32.partialorder %v372_v30, 0.0 }
 0x170   :  { %vm389_vm15 = vcmp.ge.f32.partialorder %v373_v31, 0.0  ;;  %vm390_vm0 = vcmp.ge.f32.partialorder %v374_v32, 0.0  ;;  %v391_v33 = vmul.f32 0.2, %v359_v47  ;;  %v392_v34 = vmul.f32 0.2, %v360_v48 }
 0x171   :  { %v393_v35 = vmul.f32 0.2, %v361_v49  ;;  %v394_v36 = vmul.f32 0.2, %v362_v50  ;;  %v395_v21 = vmul.f32 0.2, %v363_v51 }
 0x172   :  { %v396_v27 = vmul.f32 0.2, %v364_v52  ;;  %v397_v26 = vmul.f32 0.2, %v365_v53  ;;  %v398_v29 = vmul.f32 0.2, %v366_v54  ;;  %v408_v60 = vsel %vm376_vm2, %v360_v48, %v392_v34 }
 0x173   :  { %v399_v37 = vmul.f32 0.2, %v367_v55  ;;  %vm914_vm7 = vcmp.ge.f32.partialorder %v359_v47, 0.0  ;;  %v400_v57 = vmul.f32 0.2, %v368_v56  ;;  %v409_v0 = vsel %vm377_vm3, %v361_v49, %v393_v35 }
 0x174   :  { %v407_v38 = vsel %vm914_vm7, %v359_v47, %v391_v33  ;;  %v401_v58 = vmul.f32 0.2, %v369_v25  ;;  %v402_v59 = vmul.f32 0.2, %v370_v16  ;;  %v403_v61 = vmul.f32 0.2, %v371_v28 }
 0x175   :  { %v404_v62 = vmul.f32 0.2, %v372_v30  ;;  %v405_v63 = vmul.f32 0.2, %v373_v31  ;;  %v406_v1 = vmul.f32 0.2, %v374_v32  ;;  %v410_v2 = vsel %vm378_vm4, %v362_v50, %v394_v36 }
 0x176   :  { %v411_v3 = vsel %vm379_vm5, %v363_v51, %v395_v21  ;;  %v412_v4 = vsel %vm380_vm6, %v364_v52, %v396_v27  ;;  %vm915_vm1 = vcmp.ge.f32.partialorder %v365_v53, 0.0  ;;  %v414_v6 = vsel %vm382_vm8, %v366_v54, %v398_v29 }
 0x177   :  { %v413_v5 = vsel %vm915_vm1, %v365_v53, %v397_v26  ;;  %v415_v7 = vsel %vm383_vm9, %v367_v55, %v399_v37  ;;  %v416_v8 = vsel %vm384_vm10, %v368_v56, %v400_v57  ;;  %v417_v9 = vsel %vm385_vm11, %v369_v25, %v401_v58 }
 0x178   :  { %v418_v10 = vsel %vm386_vm12, %v370_v16, %v402_v59  ;;  %v419_v11 = vsel %vm387_vm13, %v371_v28, %v403_v61  ;;  %v420_v12 = vsel %vm388_vm14, %v372_v30, %v404_v62  ;;  %v421_v13 = vsel %vm389_vm15, %v373_v31, %v405_v63 }
 0x179   :  { %v422_v14 = vsel %vm390_vm0, %v374_v32, %v406_v1  ;;  %v541_v15 = vpack.c.bf16 %v407_v38, %v407_v38  ;;  %v542_v17 = vpack.c.bf16 %v408_v60, %v408_v60  ;;  %v543_v18 = vpack.c.bf16 %v409_v0, %v409_v0 }
 0x17a   :  { %v544_v19 = vpack.c.bf16 %v410_v2, %v410_v2  ;;  %v545_v20 = vpack.c.bf16 %v411_v3, %v411_v3  ;;  %v546_v22 = vpack.c.bf16 %v412_v4, %v412_v4  ;;  %v547_v23 = vpack.c.bf16 %v413_v5, %v413_v5 }
 0x17b   :  { %v548_v24 = vpack.c.bf16 %v414_v6, %v414_v6  ;;  %v549_v39 = vpack.c.bf16 %v415_v7, %v415_v7  ;;  %v550_v40 = vpack.c.bf16 %v416_v8, %v416_v8  ;;  %vm916_vm1 = vcmask 125952  }
 0x17c   :  { %488 = vst.msk [vmem:[%s913_s3] sm:$0xf] %vm916_vm1, %v541_v15  ;;  %vm917_vm2 = vmmov %vm916_vm1  ;;  %v551_v41 = vpack.c.bf16 %v417_v9, %v417_v9  ;;  %v552_v42 = vpack.c.bf16 %v418_v10, %v418_v10  ;;  %v553_v43 = vpack.c.bf16 %v419_v11, %v419_v11  ;;  %v554_v44 = vpack.c.bf16 %v420_v12, %v420_v12 }
 0x17d   :  { %489 = vst.msk [vmem:[%s913_s3 + $0x4] sm:$0xf] %vm917_vm2, %v542_v17  ;;  %vm918_vm3 = vmmov %vm916_vm1  ;;  %v555_v45 = vpack.c.bf16 %v421_v13, %v421_v13  ;;  %v556_v46 = vpack.c.bf16 %v422_v14, %v422_v14 }
 0x17e   :  { %490 = vst.msk [vmem:[%s913_s3 + $0x8] sm:$0xf] %vm918_vm3, %v543_v18  ;;  %vm919_vm4 = vmmov %vm916_vm1 }
 0x17f   :  { %491 = vst.msk [vmem:[%s913_s3 + $0xc] sm:$0xf] %vm919_vm4, %v544_v19  ;;  %vm920_vm5 = vmmov %vm916_vm1 }
 0x180   :  { %492 = vst.msk [vmem:[%s913_s3 + $0x10] sm:$0xf] %vm920_vm5, %v545_v20  ;;  %vm921_vm6 = vmmov %vm916_vm1 }
 0x181   :  { %493 = vst.msk [vmem:[%s913_s3 + $0x14] sm:$0xf] %vm921_vm6, %v546_v22  ;;  %vm922_vm7 = vmmov %vm916_vm1 }
 0x182   :  { %494 = vst.msk [vmem:[%s913_s3 + $0x18] sm:$0xf] %vm922_vm7, %v547_v23  ;;  %vm923_vm8 = vmmov %vm916_vm1 }
 0x183   :  { %495 = vst.msk [vmem:[%s913_s3 + $0x1c] sm:$0xf] %vm923_vm8, %v548_v24  ;;  %vm924_vm9 = vmmov %vm916_vm1 }
 0x184   :  { %496 = vst.msk [vmem:[%s913_s3 + $0x20] sm:$0xf] %vm924_vm9, %v549_v39  ;;  %vm925_vm10 = vmmov %vm916_vm1 }
 0x185   :  { %497 = vst.msk [vmem:[%s913_s3 + $0x24] sm:$0xf] %vm925_vm10, %v550_v40  ;;  %vm926_vm11 = vmmov %vm916_vm1 }
 0x186   :  { %498 = vst.msk [vmem:[%s913_s3 + $0x28] sm:$0xf] %vm926_vm11, %v551_v41  ;;  %vm927_vm12 = vmmov %vm916_vm1 }
 0x187   :  { %499 = vst.msk [vmem:[%s913_s3 + $0x2c] sm:$0xf] %vm927_vm12, %v552_v42  ;;  %vm928_vm13 = vmmov %vm916_vm1 }
 0x188   :  { %500 = vst.msk [vmem:[%s913_s3 + $0x30] sm:$0xf] %vm928_vm13, %v553_v43  ;;  %vm929_vm14 = vmmov %vm916_vm1 }
 0x189   :  { %501 = vst.msk [vmem:[%s913_s3 + $0x34] sm:$0xf] %vm929_vm14, %v554_v44  ;;  %vm930_vm15 = vmmov %vm916_vm1 }
 0x18a   :  { %502 = vst.msk [vmem:[%s913_s3 + $0x38] sm:$0xf] %vm930_vm15, %v555_v45  ;;  %vm931_vm0 = vmmov %vm916_vm1 }
 0x18b   :  { %503 = vst.msk [vmem:[%s913_s3 + $0x3c] sm:$0xf] %vm931_vm0, %v556_v46 }

// kernel: discriminator_forward.7
= control target key start
LH: loop header
LB: loop body
LE: loop exit
PB: predicated region body
PF: predicated region fallthrough
CT: control target
= control target key end

     0   :  { %vm223_vm0 = vcmask 261120   ;;  %vm295_vm5 = vcmask 257024   ;;  %s504_s1 = inlined_call_operand.vmem [shape: bf16[256,32], index: 1, kind: input, shape index: {}]   ;;  %s505_s0 = inlined_call_operand.vmem [shape: bf16[32,256], index: 0, kind: input, shape index: {}]   ;;  %s506_s2 = inlined_call_operand.vmem [shape: f32[1,32], index: 2, kind: input, shape index: {}]   ;;  %s507_s3 = inlined_call_operand.vmem [shape: bf16[32,32], index: 3, kind: output, shape index: {}]  }
   0x1   :  { %v377_v0 = vld [vmem:[%s504_s1 + $0x40] sm:$0xff]   ;;  %v379_v2 = vld [vmem:[%s504_s1 + $0x48] sm:$0xff]   ;;  %v381_v4 = vld [vmem:[%s504_s1 + $0x50] sm:$0xff]  }
   0x2   :  { %v378_v1 = vld [vmem:[%s504_s1] sm:$0xff]   ;;  %333 = vmatprep.subr.bf16.mxu0 %v377_v0  ;;  %361 = vmatprep.subr.bf16.mxu1 %v377_v0  ;;  %v380_v3 = vld [vmem:[%s504_s1 + $0x8] sm:$0xff]   ;;  %v382_v5 = vld [vmem:[%s504_s1 + $0x10] sm:$0xff]  }
   0x3   :  { %334 = vmatpush3.bf16.msra.mxu0 %v378_v1  ;;  %369 = vmatpush3.bf16.msra.mxu1 %v378_v1  ;;  %v383_v6 = vld [vmem:[%s504_s1 + $0x58] sm:$0xff]   ;;  %v385_v8 = vld [vmem:[%s504_s1 + $0x60] sm:$0xff]   ;;  %v387_v10 = vld [vmem:[%s504_s1 + $0x68] sm:$0xff]  }
   0x4   :  { %335 = vmatprep.subr.bf16.mxu0 %v379_v2  ;;  %362 = vmatprep.subr.bf16.mxu1 %v379_v2  ;;  %v384_v7 = vld [vmem:[%s504_s1 + $0x18] sm:$0xff]   ;;  %v386_v9 = vld [vmem:[%s504_s1 + $0x20] sm:$0xff]   ;;  %v388_v13 = vld [vmem:[%s504_s1 + $0x28] sm:$0xff]  }
   0x5   :  { %v395_v11 = vld [vmem:[%s505_s0 + $0x4] ss:$8 sps:$4 sm:$0xff]   ;;  %v398_v12 = vld [vmem:[%s505_s0 + $0x14] ss:$8 sps:$4 sm:$0xff]   ;;  %v393_v18 = vld [vmem:[%s505_s0] ss:$8 sps:$4 sm:$0xff]  }
   0x6   :  { %v389_v14 = vld [vmem:[%s504_s1 + $0x70] sm:$0xff]   ;;  %206 = vmatprep.mubr.bf16.mxu0 %v395_v11  ;;  %214 = vmatprep.mubr.bf16.mxu1 %v398_v12  ;;  %v391_v16 = vld [vmem:[%s504_s1 + $0x78] sm:$0xff]   ;;  %v304_v22 = vld [vmem:[%s506_s2] ss:$0 sm:$0xff] }
   0x7   :  { %336 = vmatpush3.bf16.msra.mxu0 %v380_v3  ;;  %370 = vmatpush3.bf16.msra.mxu1 %v380_v3  ;;  %v390_v15 = vld [vmem:[%s504_s1 + $0x30] sm:$0xff]   ;;  %v392_v17 = vld [vmem:[%s504_s1 + $0x38] sm:$0xff]  }
   0x8   :  { %337 = vmatprep.subr.bf16.mxu0 %v381_v4  ;;  %363 = vmatprep.subr.bf16.mxu1 %v381_v4  ;;  %v396_v19 = vld [vmem:[%s505_s0 + $0x10] ss:$8 sps:$4 sm:$0xff]  }
   0xb   :  { %338 = vmatpush3.bf16.msra.mxu0 %v382_v5  ;;  %371 = vmatpush3.bf16.msra.mxu1 %v382_v5 }
   0xc   :  { %339 = vmatprep.subr.bf16.mxu0 %v383_v6  ;;  %364 = vmatprep.subr.bf16.mxu1 %v383_v6 }
   0xf   :  { %340 = vmatpush3.bf16.msra.mxu0 %v384_v7  ;;  %372 = vmatpush3.bf16.msra.mxu1 %v384_v7 }
  0x10   :  { %341 = vmatprep.subr.bf16.mxu0 %v385_v8  ;;  %365 = vmatprep.subr.bf16.mxu1 %v385_v8 }
  0x13   :  { %342 = vmatpush3.bf16.msra.mxu0 %v386_v9  ;;  %373 = vmatpush3.bf16.msra.mxu1 %v386_v9 }
  0x14   :  { %343 = vmatprep.subr.bf16.mxu0 %v387_v10  ;;  %366 = vmatprep.subr.bf16.mxu1 %v387_v10 }
  0x17   :  { %344 = vmatpush3.bf16.msra.mxu0 %v388_v13  ;;  %374 = vmatpush3.bf16.msra.mxu1 %v388_v13 }
  0x18   :  { %345 = vmatprep.subr.bf16.mxu0 %v389_v14  ;;  %367 = vmatprep.subr.bf16.mxu1 %v389_v14 }
  0x1b   :  { %346 = vmatpush3.bf16.msra.mxu0 %v390_v15  ;;  %375 = vmatpush3.bf16.msra.mxu1 %v390_v15 }
  0x1c   :  { %347 = vmatprep.subr.bf16.mxu0 %v391_v16  ;;  %368 = vmatprep.subr.bf16.mxu1 %v391_v16 }
  0x1f   :  { %348 = vmatpush3.bf16.msra.mxu0 %v392_v17  ;;  %376 = vmatpush3.bf16.msra.mxu1 %v392_v17 }
  0x22   :  { %207 = vmatmul.mubr.bf16.vlgmr.msra.gmra.mrb[0].mxu0 %v393_v18  ;;  %215 = vmatmul.mubr.bf16.vlgmr.msra.gmra.mrb[0].mxu1 %v396_v19 }
  0xf5   :  { %v349_v20 = vpop.f32.mrb[0].mxu0  ;;  %v355_v21 = vpop.f32.mrb[0].mxu1 }
  0xf6   :  { %v350_v23 = vpop.f32.mrb[1].mxu0  ;;  %v356_v24 = vpop.f32.mrb[1].mxu1 }
  0xf7   :  { %v351_v25 = vadd.f32 %v350_v23, %v349_v20  ;;  %v352_v26 = vpop.f32.mrb[2].mxu0  ;;  %v357_v27 = vadd.f32 %v356_v24, %v355_v21  ;;  %v358_v28 = vpop.f32.mrb[2].mxu1 }
  0xf8   :  { %v353_v29 = vpop.f32.mrb[3].mxu0  ;;  %v359_v30 = vpop.f32.mrb[3].mxu1 }
  0xf9   :  { %v209_v31 = vadd.f32 %v351_v25, %v304_v22  ;;  %v217_v32 = vadd.f32 %v357_v27, %v304_v22  ;;  %v354_v33 = vadd.f32 %v353_v29, %v352_v26  ;;  %v360_v34 = vadd.f32 %v359_v30, %v358_v28 }
  0xfb   :  { %v212_v35 = vadd.f32 %v354_v33, %v304_v22  ;;  %v224_v36 = vsel %vm223_vm0, %v209_v31, 0.0  ;;  %v227_v37 = vsel %vm223_vm0, %v217_v32, 0.0  ;;  %v220_v39 = vadd.f32 %v360_v34, %v304_v22 }
  0xfd   :  { %v225_v38 = vsel %vm223_vm0, %v212_v35, 0.0  ;;  %v229_v42 = vsel %vm223_vm0, %v220_v39, 0.0 }
  0xfe   :  { %v226_v40 = vadd.f32 %v225_v38, %v224_v36 }
 0x100   :  { %v228_v41 = vadd.f32 %v227_v37, %v226_v40 }
 0x102   :  { %v230_v43 = vadd.f32 %v229_v42, %v228_v41 }
 0x104   :  { %v231_v44 = vrot.slane %v230_v43, 4 }
 0x106   :  { %v232_v45 = vadd.f32 %v231_v44, %v230_v43 }
 0x108   :  { %v233_v46 = vrot.slane %v232_v45, 2 }
 0x10a   :  { %v234_v47 = vadd.f32 %v233_v46, %v232_v45 }
 0x10c   :  { %v235_v48 = vrot.slane %v234_v47, 1 }
 0x10e   :  { %v236_v49 = vadd.f32 %v235_v48, %v234_v47 }
 0x110   :  { %v238_v50 = vmul.f32 0.03125, %v236_v49 }
 0x112   :  { %v239_v51 = vsub.f32 %v209_v31, %v238_v50  ;;  %v240_v52 = vsub.f32 %v212_v35, %v238_v50  ;;  %v241_v53 = vsub.f32 %v217_v32, %v238_v50  ;;  %v242_v54 = vsub.f32 %v220_v39, %v238_v50 }
 0x114   :  { %v243_v55 = vmul.f32 %v239_v51, %v239_v51  ;;  %v244_v56 = vmul.f32 %v240_v52, %v240_v52  ;;  %v245_v57 = vmul.f32 %v241_v53, %v241_v53  ;;  %v246_v58 = vmul.f32 %v242_v54, %v242_v54 }
 0x116   :  { %v247_v59 = vsel %vm223_vm0, %v243_v55, 0.0  ;;  %v248_v60 = vsel %vm223_vm0, %v244_v56, 0.0  ;;  %v250_v62 = vsel %vm223_vm0, %v245_v57, 0.0  ;;  %v252_v0 = vsel %vm223_vm0, %v246_v58, 0.0 }
 0x117   :  { %v249_v61 = vadd.f32 %v248_v60, %v247_v59 }
 0x119   :  { %v251_v63 = vadd.f32 %v250_v62, %v249_v61 }
 0x11b   :  { %v253_v1 = vadd.f32 %v252_v0, %v251_v63 }
 0x11d   :  { %v254_v2 = vrot.slane %v253_v1, 4 }
 0x11f   :  { %v255_v3 = vadd.f32 %v254_v2, %v253_v1 }
 0x121   :  { %v256_v4 = vrot.slane %v255_v3, 2 }
 0x123   :  { %v257_v5 = vadd.f32 %v256_v4, %v255_v3 }
 0x125   :  { %v258_v6 = vrot.slane %v257_v5, 1 }
 0x127   :  { %v259_v7 = vadd.f32 %v258_v6, %v257_v5 }
 0x129   :  { %v260_v8 = vmul.f32 0.03125, %v259_v7 }
 0x12b   :  { %v261_v9 = vadd.f32 1e-05, %v260_v8 }
 0x12d   :  { %399 = vrsqrt.f32 %v261_v9 }
 0x137   :  { %v400_v10 = vpop.eup %399 }
 0x138   :  { %v263_v11 = vmul.f32 %v400_v10, %v239_v51  ;;  %v264_v12 = vmul.f32 %v400_v10, %v240_v52  ;;  %v265_v13 = vmul.f32 %v400_v10, %v241_v53  ;;  %v266_v14 = vmul.f32 %v400_v10, %v242_v54 }
 0x13a   :  { %vm267_vm1 = vcmp.ge.f32.partialorder %v263_v11, 0.0  ;;  %vm268_vm2 = vcmp.ge.f32.partialorder %v264_v12, 0.0  ;;  %vm269_vm3 = vcmp.ge.f32.partialorder %v265_v13, 0.0  ;;  %vm270_vm4 = vcmp.ge.f32.partialorder %v266_v14, 0.0 }
 0x13b   :  { %v271_v15 = vmul.f32 0.2, %v263_v11  ;;  %v272_v16 = vmul.f32 0.2, %v264_v12  ;;  %v273_v17 = vmul.f32 0.2, %v265_v13 }
 0x13c   :  { %v274_v18 = vmul.f32 0.2, %v266_v14 }
 0x13d   :  { %v275_v19 = vsel %vm267_vm1, %v263_v11, %v271_v15  ;;  %v276_v20 = vsel %vm268_vm2, %v264_v12, %v272_v16  ;;  %v277_v21 = vsel %vm269_vm3, %v265_v13, %v273_v17 }
 0x13e   :  { %v278_v22 = vsel %vm270_vm4, %v266_v14, %v274_v18  ;;  %v329_v23 = vpack.c.bf16 %v275_v19, %v275_v19  ;;  %v330_v24 = vpack.c.bf16 %v276_v20, %v276_v20  ;;  %v331_v25 = vpack.c.bf16 %v277_v21, %v277_v21 }
 0x13f   :  { %v332_v26 = vpack.c.bf16 %v278_v22, %v278_v22 }
 0x140   :  { %296 = vst.msk [vmem:[%s507_s3] sm:$0xf] %vm295_vm5, %v329_v23  ;;  %297 = vst.msk [vmem:[%s507_s3 + $0x4] sm:$0xf] %vm295_vm5, %v330_v24 }
 0x141   :  { %298 = vst.msk [vmem:[%s507_s3 + $0x8] sm:$0xf] %vm295_vm5, %v331_v25  ;;  %299 = vst.msk [vmem:[%s507_s3 + $0xc] sm:$0xf] %vm295_vm5, %v332_v26 }

// kernel: discriminator_forward.9
= control target key start
LH: loop header
LB: loop body
LE: loop exit
PB: predicated region body
PF: predicated region fallthrough
CT: control target
= control target key end

     0   :  { %v24_v0 = vlaneseq  ;;  %v220_v2 = vmov 1983009808   ;;  %vm186_vm0 = vcmask 1041408   ;;  %vm212_vm1 = vcmask 1024   ;;  %s261_s1 = inlined_call_operand.vmem [shape: bf16[1,1024], index: 1, kind: input, shape index: {}]   ;;  %s262_s2 = inlined_call_operand.<no memory space> [shape: f32[1,1], index: 2, kind: input, shape index: {}]   ;;  %s263_s0 = inlined_call_operand.vmem [shape: bf16[2,1024], index: 0, kind: input, shape index: {}]   ;;  %s264_s3 = inlined_call_operand.vmem [shape: f32[2,1], index: 3, kind: output, shape index: {}]  }
   0x1   :  { %v19_v1 = vld [vmem:[%s261_s1] sm:$0xff]  ;;  %v107_v3 = vunpack.c.l.s4 %v220_v2  ;;  %v8_v4 = vstv %s262_s2 }
   0x2   :  { %9 = vst [vmem:[#allocation2] sm:$0x1] %v8_v4  ;;  %v20_v5 = vunpack.c.l.bf16 %v19_v1  ;;  %v25_v6 = vshrl.u32 %v24_v0, 7  ;;  %v21_v8 = vunpack.c.h.bf16 %v19_v1  ;;  %v16_v26 = vld [vmem:[%s263_s0] sm:$0xff] }
   0x3   :  { %v108_v7 = vunpack.c.0.s8 %v107_v3  ;;  %v17_v35 = vunpack.c.l.bf16 %v16_v26  ;;  %v18_v38 = vunpack.c.h.bf16 %v16_v26 }
   0x4   :  { %v26_v9 = vsub.s32 0, %v25_v6  ;;  %v30_v10 = vsub.s32 2, %v25_v6  ;;  %v34_v11 = vsub.s32 4, %v25_v6  ;;  %v38_v12 = vsub.s32 6, %v25_v6 }
   0x5   :  { %v111_v13 = vsub.s32 %v108_v7, %v25_v6 }
   0x6   :  { %v27_v14 = vrot.slane %v20_v5, %v26_v9  ;;  %v31_v15 = vrot.slane %v20_v5, %v30_v10  ;;  %v35_v16 = vrot.slane %v20_v5, %v34_v11  ;;  %v39_v17 = vrot.slane %v20_v5, %v38_v12 }
   0x7   :  { %v43_v18 = vrot.slane %v21_v8, %v26_v9  ;;  %v47_v19 = vrot.slane %v21_v8, %v30_v10  ;;  %v51_v20 = vrot.slane %v21_v8, %v34_v11  ;;  %v55_v21 = vrot.slane %v21_v8, %v38_v12 }
   0x8   :  { %v67_v22 = vrot.slane %v27_v14, %v26_v9  ;;  %v71_v23 = vrot.slane %v31_v15, %v26_v9  ;;  %v75_v24 = vrot.slane %v35_v16, %v26_v9  ;;  %v79_v25 = vrot.slane %v39_v17, %v26_v9 }
   0x9   :  { %v83_v27 = vrot.slane %v43_v18, %v26_v9  ;;  %v87_v28 = vrot.slane %v47_v19, %v26_v9  ;;  %v91_v29 = vrot.slane %v51_v20, %v26_v9  ;;  %v95_v30 = vrot.slane %v55_v21, %v26_v9  ;;  %v218_v6 = vld [vmem:[#allocation2] ss:$0 sm:$0xff] }
   0xa   :  { %v104_v31 = vcombine.low %v67_v22, %v71_v23  ;;  %v105_v32 = vcombine.low %v75_v24, %v79_v25 }
   0xb   :  { %v121_v33 = vcombine.low %v83_v27, %v87_v28  ;;  %v122_v34 = vcombine.low %v91_v29, %v95_v30 }
   0xc   :  { %v112_v36 = vrot.slane %v104_v31, %v111_v13  ;;  %v119_v37 = vrot.slane %v105_v32, %v111_v13 }
   0xd   :  { %v129_v39 = vrot.slane %v121_v33, %v111_v13  ;;  %v136_v40 = vrot.slane %v122_v34, %v111_v13 }
   0xe   :  { %v120_v41 = vcombine.low %v112_v36, %v119_v37 }
   0xf   :  { %v137_v42 = vcombine.low %v129_v39, %v136_v40 }
  0x10   :  { %v140_v43 = vmul.f32 %v120_v41, %v17_v35 }
  0x11   :  { %v141_v44 = vmul.f32 %v137_v42, %v18_v38 }
  0x12   :  { %v144_v45 = vcombine.high %v140_v43, %v140_v43  ;;  %v151_v46 = vrot.slane %v140_v43, %v111_v13 }
  0x13   :  { %v161_v47 = vcombine.high %v141_v44, %v141_v44  ;;  %v168_v50 = vrot.slane %v141_v44, %v111_v13 }
  0x14   :  { %v158_v48 = vrot.slane %v144_v45, %v111_v13  ;;  %v159_v49 = vcombine.high %v151_v46, %v151_v46  ;;  %v187_v51 = vsel %vm186_vm0, %v151_v46, 0.0 }
  0x15   :  { %v175_v56 = vrot.slane %v161_v47, %v111_v13  ;;  %v176_v57 = vcombine.high %v168_v50, %v168_v50  ;;  %v194_v60 = vsel %vm186_vm0, %v168_v50, 0.0 }
  0x16   :  { %v160_v52 = vcombine.high %v158_v48, %v158_v48  ;;  %v188_v53 = vsel %vm186_vm0, %v159_v49, 0.0  ;;  %v190_v54 = vsel %vm186_vm0, %v158_v48, 0.0 }
  0x17   :  { %v189_v55 = vadd.f32 %v188_v53, %v187_v51  ;;  %v177_v62 = vcombine.high %v175_v56, %v175_v56  ;;  %v196_v63 = vsel %vm186_vm0, %v176_v57, 0.0  ;;  %v198_v1 = vsel %vm186_vm0, %v175_v56, 0.0 }
  0x18   :  { %v192_v58 = vsel %vm186_vm0, %v160_v52, 0.0 }
  0x19   :  { %v191_v59 = vadd.f32 %v190_v54, %v189_v55  ;;  %v200_v3 = vsel %vm186_vm0, %v177_v62, 0.0 }
  0x1b   :  { %v193_v61 = vadd.f32 %v192_v58, %v191_v59 }
  0x1d   :  { %v195_v0 = vadd.f32 %v194_v60, %v193_v61 }
  0x1f   :  { %v197_v2 = vadd.f32 %v196_v63, %v195_v0 }
  0x21   :  { %v199_v4 = vadd.f32 %v198_v1, %v197_v2 }
  0x23   :  { %v201_v5 = vadd.f32 %v200_v3, %v199_v4 }
  0x25   :  { %202 = vadd.xlane.f32.xlu0 %v201_v5 }
  0xb2   :  { %v203_v7 = vpop.xlane.xlu0 %202 }
  0xb3   :  { %v211_v8 = vadd.f32 %v218_v6, %v203_v7 }
  0xb5   :  { %213 = vst.msk [vmem:[%s264_s3] sm:$0x3] %vm212_vm1, %v211_v8 }

// kernel: discriminator_forward.8
= control target key start
LH: loop header
LB: loop body
LE: loop exit
PB: predicated region body
PF: predicated region fallthrough
CT: control target
= control target key end

     0   :  { %vm374_vm0 = vcmask 523264   ;;  %vm401_vm2 = vcmask 519168   ;;  %s654_s1 = inlined_call_operand.vmem [shape: bf16[512,64], index: 1, kind: input, shape index: {}]   ;;  %s655_s0 = inlined_call_operand.vmem [shape: bf16[8,512], index: 0, kind: input, shape index: {}]   ;;  %s656_s2 = inlined_call_operand.vmem [shape: f32[1,64], index: 2, kind: input, shape index: {}]   ;;  %s657_s3 = inlined_call_operand.vmem [shape: bf16[8,64], index: 3, kind: output, shape index: {}]  }
   0x1   :  { %v488_v0 = vld [vmem:[%s654_s1 + $0x40] sm:$0xff]   ;;  %v492_v4 = vld [vmem:[%s654_s1 + $0x48] sm:$0xff]   ;;  %v496_v8 = vld [vmem:[%s654_s1 + $0x50] sm:$0xff]  }
   0x2   :  { %v489_v1 = vld [vmem:[%s654_s1 + $0xc0] sm:$0xff]   ;;  %444 = vmatprep.subr.bf16.mxu0 %v488_v0  ;;  %v493_v5 = vld [vmem:[%s654_s1 + $0xc8] sm:$0xff]   ;;  %v497_v9 = vld [vmem:[%s654_s1 + $0xd0] sm:$0xff]  }
   0x3   :  { %v490_v2 = vld [vmem:[%s654_s1] sm:$0xff]   ;;  %466 = vmatprep.subr.bf16.mxu1 %v489_v1  ;;  %v494_v6 = vld [vmem:[%s654_s1 + $0x8] sm:$0xff]   ;;  %v498_v10 = vld [vmem:[%s654_s1 + $0x10] sm:$0xff]  }
   0x4   :  { %v491_v3 = vld [vmem:[%s654_s1 + $0x80] sm:$0xff]   ;;  %445 = vmatpush3.bf16.msra.mxu0 %v490_v2  ;;  %v495_v7 = vld [vmem:[%s654_s1 + $0x88] sm:$0xff]   ;;  %v499_v11 = vld [vmem:[%s654_s1 + $0x90] sm:$0xff]  }
   0x5   :  { %467 = vmatpush3.bf16.msra.mxu1 %v491_v3  ;;  %446 = vmatprep.subr.bf16.mxu0 %v492_v4  ;;  %v500_v12 = vld [vmem:[%s654_s1 + $0x58] sm:$0xff]   ;;  %v504_v16 = vld [vmem:[%s654_s1 + $0x60] sm:$0xff]   ;;  %v508_v20 = vld [vmem:[%s654_s1 + $0x68] sm:$0xff]  }
   0x6   :  { %468 = vmatprep.subr.bf16.mxu1 %v493_v5  ;;  %v501_v13 = vld [vmem:[%s654_s1 + $0xd8] sm:$0xff]   ;;  %v505_v17 = vld [vmem:[%s654_s1 + $0xe0] sm:$0xff]   ;;  %v509_v21 = vld [vmem:[%s654_s1 + $0xe8] sm:$0xff]  }
   0x7   :  { %v502_v14 = vld [vmem:[%s654_s1 + $0x18] sm:$0xff]   ;;  %v506_v18 = vld [vmem:[%s654_s1 + $0x20] sm:$0xff]   ;;  %v510_v22 = vld [vmem:[%s654_s1 + $0x28] sm:$0xff]  }
   0x8   :  { %447 = vmatpush3.bf16.msra.mxu0 %v494_v6  ;;  %v503_v15 = vld [vmem:[%s654_s1 + $0x98] sm:$0xff]   ;;  %v507_v19 = vld [vmem:[%s654_s1 + $0xa0] sm:$0xff]   ;;  %v511_v23 = vld [vmem:[%s654_s1 + $0xa8] sm:$0xff]  }
   0x9   :  { %469 = vmatpush3.bf16.msra.mxu1 %v495_v7  ;;  %448 = vmatprep.subr.bf16.mxu0 %v496_v8  ;;  %v512_v24 = vld [vmem:[%s654_s1 + $0x70] sm:$0xff]   ;;  %v516_v28 = vld [vmem:[%s654_s1 + $0x78] sm:$0xff]   ;;  %v15_v32 = vld [vmem:[%s655_s0] sm:$0xff] }
   0xa   :  { %470 = vmatprep.subr.bf16.mxu1 %v497_v9  ;;  %v513_v25 = vld [vmem:[%s654_s1 + $0xf0] sm:$0xff]   ;;  %v517_v29 = vld [vmem:[%s654_s1 + $0xf8] sm:$0xff]   ;;  %v16_v33 = vld [vmem:[%s655_s0 + $0x8] sm:$0xff]  ;;  %v408_v34 = vcombine.low %v15_v32, %v15_v32  ;;  %v409_v35 = vcombine.high %v15_v32, %v15_v32 }
   0xb   :  { %v514_v26 = vld [vmem:[%s654_s1 + $0x30] sm:$0xff]   ;;  %v518_v30 = vld [vmem:[%s654_s1 + $0x38] sm:$0xff]   ;;  %v410_v36 = vcombine.low %v16_v33, %v16_v33  ;;  %v411_v37 = vcombine.high %v16_v33, %v16_v33  ;;  %v407_v40 = vld [vmem:[%s656_s2] ss:$0 sm:$0xff] }
   0xc   :  { %449 = vmatpush3.bf16.msra.mxu0 %v498_v10  ;;  %v515_v27 = vld [vmem:[%s654_s1 + $0xb0] sm:$0xff]   ;;  %v519_v31 = vld [vmem:[%s654_s1 + $0xb8] sm:$0xff]   ;;  %326 = vmatprep.mubr.bf16.mxu0 %v409_v35 }
   0xd   :  { %471 = vmatpush3.bf16.msra.mxu1 %v499_v11  ;;  %450 = vmatprep.subr.bf16.mxu0 %v500_v12 }
   0xe   :  { %472 = vmatprep.subr.bf16.mxu1 %v501_v13  ;;  %366 = vmatprep.mubr.bf16.mxu1 %v411_v37 }
  0x10   :  { %451 = vmatpush3.bf16.msra.mxu0 %v502_v14 }
  0x11   :  { %473 = vmatpush3.bf16.msra.mxu1 %v503_v15  ;;  %452 = vmatprep.subr.bf16.mxu0 %v504_v16 }
  0x12   :  { %474 = vmatprep.subr.bf16.mxu1 %v505_v17 }
  0x14   :  { %453 = vmatpush3.bf16.msra.mxu0 %v506_v18 }
  0x15   :  { %475 = vmatpush3.bf16.msra.mxu1 %v507_v19  ;;  %454 = vmatprep.subr.bf16.mxu0 %v508_v20 }
  0x16   :  { %476 = vmatprep.subr.bf16.mxu1 %v509_v21 }
  0x18   :  { %455 = vmatpush3.bf16.msra.mxu0 %v510_v22 }
  0x19   :  { %477 = vmatpush3.bf16.msra.mxu1 %v511_v23  ;;  %456 = vmatprep.subr.bf16.mxu0 %v512_v24 }
  0x1a   :  { %478 = vmatprep.subr.bf16.mxu1 %v513_v25 }
  0x1c   :  { %457 = vmatpush3.bf16.msra.mxu0 %v514_v26 }
  0x1d   :  { %479 = vmatpush3.bf16.msra.mxu1 %v515_v27  ;;  %458 = vmatprep.subr.bf16.mxu0 %v516_v28 }
  0x1e   :  { %480 = vmatprep.subr.bf16.mxu1 %v517_v29 }
  0x20   :  { %459 = vmatpush3.bf16.msra.mxu0 %v518_v30 }
  0x21   :  { %481 = vmatpush3.bf16.msra.mxu1 %v519_v31 }
  0x23   :  { %327 = vmatmul.mubr.bf16.vlgmr.msra.gmra.mrb[0].mxu0 %v408_v34 }
  0x24   :  { %367 = vmatmul.mubr.bf16.vlgmr.msra.gmra.mrb[0].mxu1 %v410_v36 }
  0xf6   :  { %v460_v38 = vpop.f32.mrb[0].mxu0 }
  0xf7   :  { %v482_v39 = vpop.f32.mrb[0].mxu1  ;;  %v461_v41 = vpop.f32.mrb[1].mxu0 }
  0xf8   :  { %v483_v42 = vpop.f32.mrb[1].mxu1  ;;  %v462_v43 = vadd.f32 %v461_v41, %v460_v38  ;;  %v463_v45 = vpop.f32.mrb[2].mxu0 }
  0xf9   :  { %v484_v44 = vadd.f32 %v483_v42, %v482_v39  ;;  %v485_v46 = vpop.f32.mrb[2].mxu1  ;;  %v464_v47 = vpop.f32.mrb[3].mxu0 }
  0xfa   :  { %v486_v48 = vpop.f32.mrb[3].mxu1  ;;  %v329_v49 = vadd.f32 %v462_v43, %v407_v40 }
  0xfc   :  { %v369_v50 = vadd.f32 %v484_v44, %v329_v49 }
  0xfe   :  { %v375_v51 = vsel %vm374_vm0, %v369_v50, 0.0 }
  0xff   :  { %v376_v52 = vrot.slane %v375_v51, 4 }
 0x101   :  { %v377_v53 = vadd.f32 %v376_v52, %v375_v51 }
 0x103   :  { %v378_v54 = vrot.slane %v377_v53, 2 }
 0x105   :  { %v379_v55 = vadd.f32 %v378_v54, %v377_v53 }
 0x107   :  { %v380_v56 = vrot.slane %v379_v55, 1 }
 0x109   :  { %v381_v57 = vadd.f32 %v380_v56, %v379_v55 }
 0x10b   :  { %v383_v58 = vmul.f32 0.125, %v381_v57 }
 0x10d   :  { %v384_v59 = vsub.f32 %v369_v50, %v383_v58 }
 0x10f   :  { %v385_v60 = vmul.f32 %v384_v59, %v384_v59 }
 0x111   :  { %v386_v61 = vsel %vm374_vm0, %v385_v60, 0.0 }
 0x112   :  { %v387_v62 = vrot.slane %v386_v61, 4 }
 0x114   :  { %v388_v63 = vadd.f32 %v387_v62, %v386_v61 }
 0x116   :  { %v389_v0 = vrot.slane %v388_v63, 2 }
 0x118   :  { %v390_v1 = vadd.f32 %v389_v0, %v388_v63 }
 0x11a   :  { %v391_v2 = vrot.slane %v390_v1, 1 }
 0x11c   :  { %v392_v3 = vadd.f32 %v391_v2, %v390_v1 }
 0x11e   :  { %v393_v4 = vmul.f32 0.125, %v392_v3 }
 0x120   :  { %v394_v5 = vadd.f32 1e-05, %v393_v4 }
 0x122   :  { %524 = vrsqrt.f32 %v394_v5 }
 0x12c   :  { %v525_v6 = vpop.eup %524 }
 0x12d   :  { %v396_v7 = vmul.f32 %v525_v6, %v384_v59 }
 0x12f   :  { %vm397_vm1 = vcmp.ge.f32.partialorder %v396_v7, 0.0  ;;  %v398_v8 = vmul.f32 0.2, %v396_v7 }
 0x131   :  { %v399_v9 = vsel %vm397_vm1, %v396_v7, %v398_v8 }
 0x132   :  { %v400_v10 = vpack.c.bf16 %v399_v9, %v399_v9 }
 0x134   :  { %402 = vst.msk [vmem:[%s657_s3] sm:$0xf] %vm401_vm2, %v400_v10 }

</bundles_post_ra>
